<compile_context>
chip_gen: v7x
topology: tpu7x:2x2x1
jax: 0.10.0
libtpu: 0.0.40
codegen_flags: <defaults>
</compile_context>

<pallas_src>
import jax
import jax.numpy as jnp
from jax import lax
from jax.experimental import pallas as pl
from jax.experimental.pallas import tpu as pltpu

HIDDEN = 768
FC1 = 512
NCLASS = 2
NPAD = 128          # lane-dense logits width (classes padded 2 -> 128)


def _round_up(x, m):
    return (x + m - 1) // m * m


def _cdiv(a, b):
    return (a + b - 1) // b


def _choose_tiles(B, max_block=512):
    """Adaptive batch tiling.

    * tiles up to `max_block` rows amortize the ~0.35 us per-grid-step cost,
    * >= 2 grid steps whenever B >= 16 so the "parallel" batch axis actually
      shards across both v7x TensorCores,
    * block_b = round_up(ceil(B / n_tiles), 8) bounds padded-row MXU waste
      (instead of always padding up to a full max_block tile).
    """
    cap = min(max_block, _round_up(B, 8))
    n_tiles = _cdiv(B, cap)
    if B >= 16:
        n_tiles = max(n_tiles, 2)
    block_b = _round_up(_cdiv(B, n_tiles), 8)
    nb = _cdiv(B, block_b)
    return block_b, nb


def _choose_sub(block_b):
    """In-kernel row sub-blocks: >= 2 independent chunks per grid step lets the
    LLO scheduler co-issue chunk i+1's MXU work with chunk i's tanh/log-softmax
    epilogue. Only split when chunks divide evenly and stay >= 128 rows."""
    if block_b >= 256 and block_b % 128 == 0:
        return 128
    return block_b


def _make_head_kernel(n_sub, sub):
    """pooler dense+tanh -> fc1 -> ReLU -> (dropout=id) -> fc2(padded) -> LogSoftmax."""

    def kernel(x_ref, pw_ref, pb_ref, w1_ref, b1_ref, w2_ref, b2_ref, out_ref):
        # Weights/biases are VMEM-resident (constant index_maps); hoist the reads
        # out of the sub-block loop.
        pw = pw_ref[...]
        pb = pb_ref[...]
        w1 = w1_ref[...]
        b1 = b1_ref[...]
        w2 = w2_ref[...]
        b2 = b2_ref[...]

        def body(s, carry):
            r0 = pl.multiple_of(s * sub, 8)
            x = x_ref[pl.ds(r0, sub), :]                                # (sub, 768) bf16

            # BERT pooler dense + tanh                      -> MXU + EUP
            cls = jnp.tanh(jnp.dot(x, pw, preferred_element_type=jnp.float32) + pb)

            # fc1 + ReLU                                    -> MXU + VPU
            h = jnp.maximum(
                jnp.dot(cls.astype(jnp.bfloat16), w1,
                        preferred_element_type=jnp.float32) + b1, 0.0)
            # dropout(p=0.1): identity in eval / inference mode.
            # TODO(synk): training-mode dropout would need pltpu.prng_seed + prng_random_bits.

            # fc2 padded to 128 lanes (cols >= NCLASS: zero W, -1e30 bias) -> MXU
            logits = jnp.dot(h.astype(jnp.bfloat16), w2,
                             preferred_element_type=jnp.float32) + b2

            # LogSoftmax over the lane-dense 128-wide logits (f32); padded lanes
            # contribute exp(-1e30 - m) == 0, so lanes [0, NCLASS) equal the
            # exact 2-class result.
            m = jnp.max(logits, axis=-1, keepdims=True)
            z = logits - m
            lse = jnp.log(jnp.sum(jnp.exp(z), axis=-1, keepdims=True))
            # bf16 store halves writeback traffic.  Padded-lane values (~ -1e30)
            # are meaningless — never reduce over all 128 output lanes.
            out_ref[pl.ds(r0, sub), :] = (z - lse).astype(out_ref.dtype)
            return carry

        if n_sub == 1:
            body(0, None)
        else:
            lax.fori_loop(0, n_sub, body, None, unroll=True)

    return kernel


def bert_arch_forward(pooled, pool_w, pool_b, w1, b1, w2, b2, *, max_block_b=512):
    """BERT_Arch head: grid over batch, weights VMEM-resident, activations streamed."""
    B = pooled.shape[0]
    block_b, nb = _choose_tiles(B, max_block_b)
    Bp = nb * block_b
    sub = _choose_sub(block_b)
    n_sub = block_b // sub

    x = pooled.astype(jnp.bfloat16)
    if Bp != B:
        x = jnp.pad(x, ((0, Bp - B), (0, 0)))    # tail rows computed, then sliced off

    # Lane-dense fc2: zero-pad weights to (512, 128); pad bias with -1e30 so the
    # log-softmax ignores the fake classes.
    w2p = jnp.zeros((FC1, NPAD), jnp.bfloat16).at[:, :NCLASS].set(w2.astype(jnp.bfloat16))
    b2p = jnp.full((1, NPAD), -1e30, jnp.float32).at[:, :NCLASS].set(b2.astype(jnp.float32))

    const = lambda i: (0, 0)                     # weights resident across grid steps
    cost = pl.CostEstimate(
        flops=2 * Bp * (HIDDEN * HIDDEN + HIDDEN * FC1 + FC1 * NPAD),
        transcendentals=Bp * (HIDDEN + NPAD),    # tanh + exp
        bytes_accessed=(Bp * HIDDEN * 2 + Bp * NPAD * 2
                        + HIDDEN * HIDDEN * 2 + HIDDEN * FC1 * 2 + FC1 * NPAD * 2
                        + (HIDDEN + FC1 + NPAD) * 4),
    )

    out = pl.pallas_call(
        _make_head_kernel(n_sub, sub),
        out_shape=jax.ShapeDtypeStruct((Bp, NPAD), jnp.bfloat16),
        grid=(nb,),
        in_specs=[
            pl.BlockSpec((block_b, HIDDEN), lambda i: (i, 0)),   # streamed activations
            # Weights/biases: constant index_maps -> fetched once, VMEM-resident.
            # TODO(synk): pipeline_mode=pl.Buffered(1) here would drop the redundant
            # second weight buffer (~2 MiB); only relevant for block_b ~1024 on v7x.
            pl.BlockSpec((HIDDEN, HIDDEN), const),               # pooler W (bf16)
            pl.BlockSpec((1, HIDDEN), const),                    # pooler b (f32)
            pl.BlockSpec((HIDDEN, FC1), const),                  # fc1 W (bf16)
            pl.BlockSpec((1, FC1), const),                       # fc1 b (f32)
            pl.BlockSpec((FC1, NPAD), const),                    # fc2 W padded (bf16)
            pl.BlockSpec((1, NPAD), const),                      # fc2 b padded (f32)
        ],
        out_specs=pl.BlockSpec((block_b, NPAD), lambda i: (i, 0)),
        compiler_params=pltpu.CompilerParams(
            dimension_semantics=("parallel",),                   # megacore on v7x
            vmem_limit_bytes=32 * 1024 * 1024,                   # safe on v5e/v6e/v7x
        ),
        cost_estimate=cost,
    )(x, pool_w.astype(jnp.bfloat16), pool_b.astype(jnp.float32),
      w1.astype(jnp.bfloat16), b1.astype(jnp.float32), w2p, b2p)

    # Only the 2 real classes leave the function; cast back to f32 for API parity.
    return out[:B, :NCLASS].astype(jnp.float32)


def embed_and_pool(sent_id, mask, emb_table):
    """Deterministic stand-in for the BERT encoder up to the CLS hidden state:
    embedding gather + masked mean (plain-JAX glue). The pooler dense+tanh is
    fused into the Pallas kernel as its first MXU stage.
    # TODO(synk): the pretrained transformer encoder has no in-script Pallas equivalent.
    """
    emb = jnp.take(emb_table, sent_id, axis=0)                   # (B, S, 768)
    m = mask.astype(jnp.float32)[..., None]                      # (B, S, 1)
    return jnp.sum(emb * m, axis=1) / jnp.maximum(jnp.sum(m, axis=1), 1.0)


def reference_forward(pooled, pool_w, pool_b, w1, b1, w2, b2):
    """Plain-JAX reference with the same bf16 MXU-input casts as the kernel."""
    x = pooled.astype(jnp.bfloat16)
    cls = jnp.tanh(jnp.dot(x, pool_w.astype(jnp.bfloat16),
                           preferred_element_type=jnp.float32) + pool_b)
    h = jnp.maximum(jnp.dot(cls.astype(jnp.bfloat16), w1.astype(jnp.bfloat16),
                            preferred_element_type=jnp.float32) + b1, 0.0)
    logits = jnp.dot(h.astype(jnp.bfloat16), w2.astype(jnp.bfloat16),
                     preferred_element_type=jnp.float32) + b2
    return jax.nn.log_softmax(logits, axis=1)


def init_params(key):
    """Deterministic PyTorch-Linear-style uniform init."""
    ks = jax.random.split(key, 8)

    def linear(kw, kb, fan_in, fan_out):
        bound = 1.0 / jnp.sqrt(fan_in)
        w = jax.random.uniform(kw, (fan_in, fan_out), jnp.float32, -bound, bound)
        b = jax.random.uniform(kb, (1, fan_out), jnp.float32, -bound, bound)
        return w, b

    w1, b1 = linear(ks[0], ks[1], HIDDEN, FC1)       # fc1: 768 -> 512
    w2, b2 = linear(ks[2], ks[3], FC1, NCLASS)       # fc2: 512 -> 2
    vocab = 100
    emb_table = 0.02 * jax.random.normal(ks[4], (vocab, HIDDEN), jnp.float32)
    pool_w, pool_b = linear(ks[5], ks[6], HIDDEN, HIDDEN)
    return w1, b1, w2, b2, emb_table, pool_w, pool_b, vocab


def _make_inputs(key, B, S, vocab):
    k_id, k_mask = jax.random.split(key)
    sent_id = jax.random.randint(k_id, (B, S), 0, vocab, dtype=jnp.int32)
    mask = (jax.random.uniform(k_mask, (B, S)) > 0.2).astype(jnp.int32)
    mask = mask.at[:, 0].set(1)   # guarantee at least one valid token per row
    return sent_id, mask


def _check(pooled, params, atol=3e-2):
    w1, b1, w2, b2, pool_w, pool_b = params
    lp = jax.jit(bert_arch_forward)(pooled, pool_w, pool_b, w1, b1, w2, b2)
    lp = jax.block_until_ready(lp)
    ref = reference_forward(pooled, pool_w, pool_b, w1, b1, w2, b2)
    assert lp.shape == (pooled.shape[0], NCLASS)
    assert jnp.allclose(lp, ref, atol=atol, rtol=atol), \
        float(jnp.max(jnp.abs(lp - ref)))
    assert jnp.allclose(jnp.sum(jnp.exp(lp), axis=1), 1.0, atol=1e-2)
    return lp


if __name__ == "__main__":
    key = jax.random.PRNGKey(0)
    w1, b1, w2, b2, emb_table, pool_w, pool_b, vocab = init_params(key)
    params = (w1, b1, w2, b2, pool_w, pool_b)

    # Small primary example: batch=16, seq=8 (>= 16 rows -> 2 grid steps / megacore).
    sent_id, mask = _make_inputs(jax.random.PRNGKey(1), 16, 8, vocab)
    pooled = embed_and_pool(sent_id, mask, emb_table)            # (16, 768) f32
    _check(pooled, params)

    # Secondary check exercising the large-batch path: 512-row tiles with
    # 4 unrolled 128-row sub-blocks per grid step, multi-step grid.
    sent_id_l, mask_l = _make_inputs(jax.random.PRNGKey(2), 1024, 8, vocab)
    pooled_l = embed_and_pool(sent_id_l, mask_l, emb_table)      # (1024, 768) f32
    _check(pooled_l, params)

    print("KERNEL_OK")
</pallas_src>

<mosaic_0001>
module attributes {stable_mosaic.version = 11 : i64} {
  func.func @kernel(%arg0: i32, %arg1: memref<8x768xbf16, #tpu.memory_space<vmem>>, %arg2: memref<768x768xbf16, #tpu.memory_space<vmem>>, %arg3: memref<1x768xf32, #tpu.memory_space<vmem>>, %arg4: memref<768x512xbf16, #tpu.memory_space<vmem>>, %arg5: memref<1x512xf32, #tpu.memory_space<vmem>>, %arg6: memref<512x128xbf16, #tpu.memory_space<vmem>>, %arg7: memref<1x128xf32, #tpu.memory_space<vmem>>, %arg8: memref<8x128xbf16, #tpu.memory_space<vmem>>) attributes {dimension_semantics = [#tpu.dimension_semantics<parallel>], iteration_bounds = array<i64: 2>, scalar_prefetch = 0 : i64, scratch_operands = 0 : i64, tpu.core_type = #tpu.core_type<tc>, window_params = [{transform_indices = @transform_0, window_bounds = array<i64: 8, 768>}, {pipeline_mode = #tpu.pipeline_mode<synchronous>, transform_indices = @transform_1, window_bounds = array<i64: 768, 768>}, {pipeline_mode = #tpu.pipeline_mode<synchronous>, transform_indices = @transform_2, window_bounds = array<i64: 1, 768>}, {pipeline_mode = #tpu.pipeline_mode<synchronous>, transform_indices = @transform_3, window_bounds = array<i64: 768, 512>}, {pipeline_mode = #tpu.pipeline_mode<synchronous>, transform_indices = @transform_4, window_bounds = array<i64: 1, 512>}, {pipeline_mode = #tpu.pipeline_mode<synchronous>, transform_indices = @transform_5, window_bounds = array<i64: 512, 128>}, {pipeline_mode = #tpu.pipeline_mode<synchronous>, transform_indices = @transform_6, window_bounds = array<i64: 1, 128>}, {transform_indices = @transform_7, window_bounds = array<i64: 8, 128>}]} {
    %c0 = arith.constant 0 : index
    %c0_0 = arith.constant 0 : index
    %0 = vector.load %arg2[%c0, %c0_0] : memref<768x768xbf16, #tpu.memory_space<vmem>>, vector<768x768xbf16>
    %c0_1 = arith.constant 0 : index
    %c0_2 = arith.constant 0 : index
    %1 = vector.load %arg3[%c0_1, %c0_2] : memref<1x768xf32, #tpu.memory_space<vmem>>, vector<1x768xf32>
    %c0_3 = arith.constant 0 : index
    %c0_4 = arith.constant 0 : index
    %2 = vector.load %arg4[%c0_3, %c0_4] : memref<768x512xbf16, #tpu.memory_space<vmem>>, vector<768x512xbf16>
    %c0_5 = arith.constant 0 : index
    %c0_6 = arith.constant 0 : index
    %3 = vector.load %arg5[%c0_5, %c0_6] : memref<1x512xf32, #tpu.memory_space<vmem>>, vector<1x512xf32>
    %c0_7 = arith.constant 0 : index
    %c0_8 = arith.constant 0 : index
    %4 = vector.load %arg6[%c0_7, %c0_8] : memref<512x128xbf16, #tpu.memory_space<vmem>>, vector<512x128xbf16>
    %c0_9 = arith.constant 0 : index
    %c0_10 = arith.constant 0 : index
    %5 = vector.load %arg7[%c0_9, %c0_10] : memref<1x128xf32, #tpu.memory_space<vmem>>, vector<1x128xf32>
    %c0_i32 = arith.constant 0 : i32
    %6 = tpu.assume_multiple %c0_i32, 8 : i32
    %7 = arith.index_cast %6 : i32 to index
    %c0_11 = arith.constant 0 : index
    %8 = vector.load %arg1[%7, %c0_11] : memref<8x768xbf16, #tpu.memory_space<vmem>>, vector<8x768xbf16>
    %cst = arith.constant dense<0.000000e+00> : vector<8x768xf32>
    %9 = tpu.matmul %8, %0, %cst {dimension_numbers = #tpu.dot_dimension_numbers<[1], [0], [0], [1], [0, 0, 1, 1], [], []>} : vector<8x768xbf16>, vector<768x768xbf16>, vector<8x768xf32> -> vector<8x768xf32>
    %10 = vector.broadcast %1 : vector<1x768xf32> to vector<8x768xf32>
    %11 = arith.addf %9, %10 : vector<8x768xf32>
    %12 = math.tanh %11 : vector<8x768xf32>
    %13 = arith.truncf %12 : vector<8x768xf32> to vector<8x768xbf16>
    %cst_12 = arith.constant dense<0.000000e+00> : vector<8x512xf32>
    %14 = tpu.matmul %13, %2, %cst_12 {dimension_numbers = #tpu.dot_dimension_numbers<[1], [0], [0], [1], [0, 0, 1, 1], [], []>} : vector<8x768xbf16>, vector<768x512xbf16>, vector<8x512xf32> -> vector<8x512xf32>
    %15 = vector.broadcast %3 : vector<1x512xf32> to vector<8x512xf32>
    %16 = arith.addf %14, %15 : vector<8x512xf32>
    %cst_13 = arith.constant 0.000000e+00 : f32
    %17 = vector.broadcast %cst_13 : f32 to vector<8x512xf32>
    %18 = arith.maximumf %16, %17 : vector<8x512xf32>
    %19 = arith.truncf %18 : vector<8x512xf32> to vector<8x512xbf16>
    %cst_14 = arith.constant dense<0.000000e+00> : vector<8x128xf32>
    %20 = tpu.matmul %19, %4, %cst_14 {dimension_numbers = #tpu.dot_dimension_numbers<[1], [0], [0], [1], [0, 0, 1, 1], [], []>} : vector<8x512xbf16>, vector<512x128xbf16>, vector<8x128xf32> -> vector<8x128xf32>
    %21 = vector.broadcast %5 : vector<1x128xf32> to vector<8x128xf32>
    %22 = arith.addf %20, %21 : vector<8x128xf32>
    %cst_15 = arith.constant dense<0xFF800000> : vector<8xf32>
    %23 = vector.multi_reduction <maximumf>, %22, %cst_15 [1] : vector<8x128xf32> to vector<8xf32>
    %24 = vector.shape_cast %23 : vector<8xf32> to vector<8x1xf32>
    %25 = vector.broadcast %24 : vector<8x1xf32> to vector<8x128xf32>
    %26 = arith.subf %22, %25 : vector<8x128xf32>
    %27 = math.exp %26 : vector<8x128xf32>
    %cst_16 = arith.constant dense<0.000000e+00> : vector<8xf32>
    %28 = vector.multi_reduction <add>, %27, %cst_16 [1] : vector<8x128xf32> to vector<8xf32>
    %29 = vector.shape_cast %28 : vector<8xf32> to vector<8x1xf32>
    %30 = math.log %29 : vector<8x1xf32>
    %31 = vector.broadcast %30 : vector<8x1xf32> to vector<8x128xf32>
    %32 = arith.subf %26, %31 : vector<8x128xf32>
    %33 = arith.truncf %32 : vector<8x128xf32> to vector<8x128xbf16>
    %34 = arith.index_cast %6 : i32 to index
    %c0_17 = arith.constant 0 : index
    %35 = vector.load %arg8[%34, %c0_17] : memref<8x128xbf16, #tpu.memory_space<vmem>>, vector<8x128xbf16>
    tpu.vector_store %arg8[%34, %c0_17], %33 {strides = array<i32>} : memref<8x128xbf16, #tpu.memory_space<vmem>>, vector<8x128xbf16>,
    return
  }
  func.func @transform_0(%arg0: i32) -> (i32, i32) {
    %c0_i32 = arith.constant 0 : i32
    %c0_i32_0 = arith.constant 0 : i32
    return %arg0, %c0_i32 : i32, i32
  }
  func.func @transform_1(%arg0: i32) -> (i32, i32) {
    %c0_i32 = arith.constant 0 : i32
    %c0_i32_0 = arith.constant 0 : i32
    %c0_i32_1 = arith.constant 0 : i32
    return %c0_i32, %c0_i32_0 : i32, i32
  }
  func.func @transform_2(%arg0: i32) -> (i32, i32) {
    %c0_i32 = arith.constant 0 : i32
    %c0_i32_0 = arith.constant 0 : i32
    %c0_i32_1 = arith.constant 0 : i32
    return %c0_i32, %c0_i32_0 : i32, i32
  }
  func.func @transform_3(%arg0: i32) -> (i32, i32) {
    %c0_i32 = arith.constant 0 : i32
    %c0_i32_0 = arith.constant 0 : i32
    %c0_i32_1 = arith.constant 0 : i32
    return %c0_i32, %c0_i32_0 : i32, i32
  }
  func.func @transform_4(%arg0: i32) -> (i32, i32) {
    %c0_i32 = arith.constant 0 : i32
    %c0_i32_0 = arith.constant 0 : i32
    %c0_i32_1 = arith.constant 0 : i32
    return %c0_i32, %c0_i32_0 : i32, i32
  }
  func.func @transform_5(%arg0: i32) -> (i32, i32) {
    %c0_i32 = arith.constant 0 : i32
    %c0_i32_0 = arith.constant 0 : i32
    %c0_i32_1 = arith.constant 0 : i32
    return %c0_i32, %c0_i32_0 : i32, i32
  }
  func.func @transform_6(%arg0: i32) -> (i32, i32) {
    %c0_i32 = arith.constant 0 : i32
    %c0_i32_0 = arith.constant 0 : i32
    %c0_i32_1 = arith.constant 0 : i32
    return %c0_i32, %c0_i32_0 : i32, i32
  }
  func.func @transform_7(%arg0: i32) -> (i32, i32) {
    %c0_i32 = arith.constant 0 : i32
    %c0_i32_0 = arith.constant 0 : i32
    return %arg0, %c0_i32 : i32, i32
  }
}

</mosaic_0001>

<bundles_post_ra>
// kernel: bert_arch_forward.1
= control target key start
LH: loop header
LB: loop body
LE: loop exit
PB: predicated region body
PF: predicated region fallthrough
CT: control target
= control target key end

     0   :  { %s5733_s24 = smov 0   ;;  %s7382_s0 = inlined_call_operand.vmem [shape: bf16[16,768], index: 0, kind: input, shape index: {}]   ;;  %s7383_s1 = inlined_call_operand.vmem [shape: bf16[768,768], index: 1, kind: input, shape index: {}]   ;;  %s7384_s2 = inlined_call_operand.vmem [shape: f32[1,768], index: 2, kind: input, shape index: {}]   ;;  %s7385_s3 = inlined_call_operand.vmem [shape: bf16[768,512], index: 3, kind: input, shape index: {}]   ;;  %s7386_s4 = inlined_call_operand.vmem [shape: f32[1,512], index: 4, kind: input, shape index: {}]   ;;  %s7387_s5 = inlined_call_operand.vmem [shape: bf16[512,128], index: 5, kind: input, shape index: {}]   ;;  %s7388_s6 = inlined_call_operand.vmem [shape: f32[1,128], index: 6, kind: input, shape index: {}]   ;;  %s7389_s7 = inlined_call_operand.vmem [shape: bf16[16,128], index: 7, kind: output, shape index: {}]  }
   0x1 LB: > { %s4282_s25 = sadd.s32 4294967295, %s5691_s24   ;;  %p4286_p0 = scmp.ge.s32.totalorder %s5691_s24, 1  ;;  %s5691_s24 = sphi %s5733_s24, %s17_s24  }
   0x2   : > { %p237_p1 = scmp.lt.s32.totalorder %s5691_s24, 3 }
   0x4   : > { %p238_p2 = pnand %p4286_p0, %p237_p1 }
   0x5   : > { %v4911_v0 = vld [vmem:[%s7383_s1 + $0x4] ss:$24 sps:$4 sm:$0xff] (!%p238_p2)   ;;  %v4915_v2 = vld [vmem:[%s7383_s1] ss:$24 sps:$4 sm:$0xff] (!%p238_p2)   ;;  %v4917_v4 = vld [vmem:[%s7383_s1 + $0x34] ss:$24 sps:$4 sm:$0xff] (!%p238_p2)  }
   0x6   : > { %241 = sbr.rel (%p238_p2) target bundleno = 1342 (0x53e), region = 48  ;;  %v4913_v1 = vld [vmem:[%s7383_s1 + $0x304] ss:$24 sps:$4 sm:$0xff] (!%p238_p2)   ;;  %2323 = vmatprep.subr.bf16.mxu1 (!%p238_p2), %v4911_v0  ;;  %v4916_v3 = vld [vmem:[%s7383_s1 + $0x300] ss:$24 sps:$4 sm:$0xff] (!%p238_p2)   ;;  %p268_p3 = scmp.lt.s32.totalorder (!%p238_p2), %s4282_s25, 1 }
   0x7   : > { %2364 = vmatprep.subr.bf16.mxu0 (!%p238_p2), %v4913_v1  ;;  %2324 = vmatpush1.bf16.msra.mxu1 (!%p238_p2), %v4915_v2  ;;  %v4919_v5 = vld [vmem:[%s7383_s1 + $0x334] ss:$24 sps:$4 sm:$0xff] (!%p238_p2)   ;;  %v4921_v6 = vld [vmem:[%s7383_s1 + $0x30] ss:$24 sps:$4 sm:$0xff] (!%p238_p2)   ;;  %v4923_v8 = vld [vmem:[%s7383_s1 + $0x64] ss:$24 sps:$4 sm:$0xff] (!%p238_p2)  }
   0x8   : > { %2365 = vmatpush1.bf16.msra.mxu0 (!%p238_p2), %v4916_v3  ;;  %2325 = vmatprep.subr.bf16.mxu1 (!%p238_p2), %v4917_v4  ;;  %v4922_v7 = vld [vmem:[%s7383_s1 + $0x330] ss:$24 sps:$4 sm:$0xff] (!%p238_p2)   ;;  %v4925_v9 = vld [vmem:[%s7383_s1 + $0x364] ss:$24 sps:$4 sm:$0xff] (!%p238_p2)   ;;  %v4927_v10 = vld [vmem:[%s7383_s1 + $0x60] ss:$24 sps:$4 sm:$0xff] (!%p238_p2)  }
   0x9   : > { %2366 = vmatprep.subr.bf16.mxu0 (!%p238_p2), %v4919_v5  ;;  %v4928_v11 = vld [vmem:[%s7383_s1 + $0x360] ss:$24 sps:$4 sm:$0xff] (!%p238_p2)   ;;  %v4929_v12 = vld [vmem:[%s7383_s1 + $0x94] ss:$24 sps:$4 sm:$0xff] (!%p238_p2)   ;;  %v4933_v14 = vld [vmem:[%s7383_s1 + $0x90] ss:$24 sps:$4 sm:$0xff] (!%p238_p2)  }
   0xa   : > { %v4931_v13 = vld [vmem:[%s7383_s1 + $0x394] ss:$24 sps:$4 sm:$0xff] (!%p238_p2)   ;;  %v4934_v15 = vld [vmem:[%s7383_s1 + $0x390] ss:$24 sps:$4 sm:$0xff] (!%p238_p2)   ;;  %v4935_v16 = vld [vmem:[%s7383_s1 + $0xc4] ss:$24 sps:$4 sm:$0xff] (!%p238_p2)  }
   0xb   : > { %2326 = vmatpush1.bf16.msra.mxu1 (!%p238_p2), %v4921_v6  ;;  %v4937_v17 = vld [vmem:[%s7383_s1 + $0x3c4] ss:$24 sps:$4 sm:$0xff] (!%p238_p2)   ;;  %v4939_v18 = vld [vmem:[%s7383_s1 + $0xc0] ss:$24 sps:$4 sm:$0xff] (!%p238_p2)   ;;  %v4941_v20 = vld [vmem:[%s7383_s1 + $0xf4] ss:$24 sps:$4 sm:$0xff] (!%p238_p2)  }
   0xc   : > { %2367 = vmatpush1.bf16.msra.mxu0 (!%p238_p2), %v4922_v7  ;;  %2327 = vmatprep.subr.bf16.mxu1 (!%p238_p2), %v4923_v8  ;;  %v4940_v19 = vld [vmem:[%s7383_s1 + $0x3c0] ss:$24 sps:$4 sm:$0xff] (!%p238_p2)   ;;  %v4943_v21 = vld [vmem:[%s7383_s1 + $0x3f4] ss:$24 sps:$4 sm:$0xff] (!%p238_p2)   ;;  %v4945_v22 = vld [vmem:[%s7383_s1 + $0xf0] ss:$24 sps:$4 sm:$0xff] (!%p238_p2)  }
   0xd   : > { %2368 = vmatprep.subr.bf16.mxu0 %v4925_v9  ;;  %v4946_v23 = vld [vmem:[%s7383_s1 + $0x3f0] ss:$24 sps:$4 sm:$0xff]   ;;  %v4947_v24 = vld [vmem:[%s7383_s1 + $0x124] ss:$24 sps:$4 sm:$0xff]   ;;  %v4951_v26 = vld [vmem:[%s7383_s1 + $0x120] ss:$24 sps:$4 sm:$0xff]  }
   0xe   : > { %v4949_v25 = vld [vmem:[%s7383_s1 + $0x424] ss:$24 sps:$4 sm:$0xff]   ;;  %v4952_v27 = vld [vmem:[%s7383_s1 + $0x420] ss:$24 sps:$4 sm:$0xff]   ;;  %v4953_v28 = vld [vmem:[%s7383_s1 + $0x154] ss:$24 sps:$4 sm:$0xff]  }
   0xf   : > { %2328 = vmatpush1.bf16.msra.mxu1 %v4927_v10  ;;  %v4955_v29 = vld [vmem:[%s7383_s1 + $0x454] ss:$24 sps:$4 sm:$0xff]   ;;  %v4957_v30 = vld [vmem:[%s7383_s1 + $0x150] ss:$24 sps:$4 sm:$0xff]   ;;  %v4959_v32 = vld [vmem:[%s7383_s1 + $0x184] ss:$24 sps:$4 sm:$0xff]  }
  0x10   : > { %2369 = vmatpush1.bf16.msra.mxu0 %v4928_v11  ;;  %2329 = vmatprep.subr.bf16.mxu1 %v4929_v12  ;;  %v4958_v31 = vld [vmem:[%s7383_s1 + $0x450] ss:$24 sps:$4 sm:$0xff]   ;;  %v4961_v33 = vld [vmem:[%s7383_s1 + $0x484] ss:$24 sps:$4 sm:$0xff]   ;;  %v4963_v34 = vld [vmem:[%s7383_s1 + $0x180] ss:$24 sps:$4 sm:$0xff]  }
  0x11   : > { %2370 = vmatprep.subr.bf16.mxu0 %v4931_v13  ;;  %v4964_v35 = vld [vmem:[%s7383_s1 + $0x480] ss:$24 sps:$4 sm:$0xff]   ;;  %s7391_s25 = smov (!%p268_p3, %s4282_s25), 1  ;;  %v4965_v36 = vld [vmem:[%s7383_s1 + $0x1b4] ss:$24 sps:$4 sm:$0xff]  }
  0x12   : > { %v4967_v37 = vld [vmem:[%s7383_s1 + $0x4b4] ss:$24 sps:$4 sm:$0xff]   ;;  %v4969_v38 = vld [vmem:[%s7383_s1 + $0x1b0] ss:$24 sps:$4 sm:$0xff]   ;;  %s4902_s18 = smul.u32 24, %s7391_s25  ;;  %s4288_s12 = sshll.u32 %s7391_s25, 2 }
  0x13   : > { %2330 = vmatpush1.bf16.msra.mxu1 %v4933_v14  ;;  %v4970_v39 = vld [vmem:[%s7383_s1 + $0x4b0] ss:$24 sps:$4 sm:$0xff]   ;;  %v4971_v40 = vld [vmem:[%s7383_s1 + $0x1e4] ss:$24 sps:$4 sm:$0xff]   ;;  %v4975_v42 = vld [vmem:[%s7383_s1 + $0x1e0] ss:$24 sps:$4 sm:$0xff]   ;;  %s276_s15 = scalar_lea.vmem %s7389_s7, %s4288_s12 }
  0x14   : > { %2371 = vmatpush1.bf16.msra.mxu0 %v4934_v15  ;;  %2331 = vmatprep.subr.bf16.mxu1 %v4935_v16  ;;  %v4973_v41 = vld [vmem:[%s7383_s1 + $0x4e4] ss:$24 sps:$4 sm:$0xff]   ;;  %v4976_v43 = vld [vmem:[%s7383_s1 + $0x4e0] ss:$24 sps:$4 sm:$0xff]   ;;  %s5883_s10 = scalar_lea.vmem %s7382_s0, %s4902_s18  ;;  %v4977_v44 = vld [vmem:[%s7383_s1 + $0x214] ss:$24 sps:$4 sm:$0xff]  }
  0x15   : > { %2372 = vmatprep.subr.bf16.mxu0 %v4937_v17  ;;  %v4979_v45 = vld [vmem:[%s7383_s1 + $0x514] ss:$24 sps:$4 sm:$0xff]   ;;  %v828_v46 = vld [vmem:[%s5883_s10] sm:$0xff]  ;;  %v4981_v49 = vld [vmem:[%s7383_s1 + $0x210] ss:$24 sps:$4 sm:$0xff]  }
  0x16   : > { %v5892_v47 = vcombine.high %v828_v46, %v828_v46  ;;  %v829_v48 = vld [vmem:[%s5883_s10 + $0x8] sm:$0xff]  ;;  %v4983_v52 = vld [vmem:[%s7383_s1 + $0x244] ss:$24 sps:$4 sm:$0xff]   ;;  %v4987_v54 = vld [vmem:[%s7383_s1 + $0x240] ss:$24 sps:$4 sm:$0xff]   ;;  %v5959_v6 = vcombine.low %v828_v46, %v828_v46 }
  0x17   : > { %2332 = vmatpush1.bf16.msra.mxu1 %v4939_v18  ;;  %v4982_v50 = vld [vmem:[%s7383_s1 + $0x510] ss:$24 sps:$4 sm:$0xff]   ;;  %v5901_v51 = vcombine.high %v829_v48, %v829_v48  ;;  %v4985_v53 = vld [vmem:[%s7383_s1 + $0x544] ss:$24 sps:$4 sm:$0xff]   ;;  %v4988_v55 = vld [vmem:[%s7383_s1 + $0x540] ss:$24 sps:$4 sm:$0xff]   ;;  %v5961_v7 = vcombine.low %v829_v48, %v829_v48 }
  0x18   : > { %2373 = vmatpush1.bf16.msra.mxu0 %v4940_v19  ;;  %2333 = vmatprep.subr.bf16.mxu1 %v4941_v20  ;;  %v4989_v56 = vld [vmem:[%s7383_s1 + $0x274] ss:$24 sps:$4 sm:$0xff]   ;;  %v4993_v58 = vld [vmem:[%s7383_s1 + $0x270] ss:$24 sps:$4 sm:$0xff]   ;;  %v4995_v60 = vld [vmem:[%s7383_s1 + $0x2a4] ss:$24 sps:$4 sm:$0xff]  }
  0x19   : > { %2374 = vmatprep.subr.bf16.mxu0 %v4943_v21  ;;  %2355 = vmatprep.mubr.bf16.mxu1 %v5892_v47  ;;  %v4991_v57 = vld [vmem:[%s7383_s1 + $0x574] ss:$24 sps:$4 sm:$0xff]   ;;  %v4994_v59 = vld [vmem:[%s7383_s1 + $0x570] ss:$24 sps:$4 sm:$0xff]   ;;  %v4997_v61 = vld [vmem:[%s7383_s1 + $0x5a4] ss:$24 sps:$4 sm:$0xff]  }
  0x1a   : > { %2396 = vmatprep.mubr.bf16.mxu0 %v5901_v51  ;;  %v4999_v62 = vld [vmem:[%s7383_s1 + $0x2a0] ss:$24 sps:$4 sm:$0xff]   ;;  %v5001_v0 = vld [vmem:[%s7383_s1 + $0x2d4] ss:$24 sps:$4 sm:$0xff]   ;;  %v5005_v2 = vld [vmem:[%s7383_s1 + $0x2d0] ss:$24 sps:$4 sm:$0xff]  }
  0x1b   : > { %2334 = vmatpush1.bf16.msra.mxu1 %v4945_v22  ;;  %v5000_v63 = vld [vmem:[%s7383_s1 + $0x5a0] ss:$24 sps:$4 sm:$0xff]   ;;  %v5003_v1 = vld [vmem:[%s7383_s1 + $0x5d4] ss:$24 sps:$4 sm:$0xff]   ;;  %v5006_v3 = vld [vmem:[%s7383_s1 + $0x5d0] ss:$24 sps:$4 sm:$0xff]  }
  0x1c   : > { %2375 = vmatpush1.bf16.msra.mxu0 %v4946_v23  ;;  %2335 = vmatprep.subr.bf16.mxu1 %v4947_v24  ;;  %v5012_v4 = vld [vmem:[%s7383_s1 + $0x604] ss:$24 sps:$4 sm:$0xff]   ;;  %v5010_v8 = vld [vmem:[%s7383_s1 + $0x600] ss:$24 sps:$4 sm:$0xff]   ;;  %v5019_v10 = vld [vmem:[%s7383_s1 + $0x634] ss:$24 sps:$4 sm:$0xff]  }
  0x1d   : > { %2376 = vmatprep.subr.bf16.mxu0 %v4949_v25  ;;  %v5015_v5 = vld [vmem:[%s7383_s1 + $0xc] ss:$24 sps:$4 sm:$0xff]   ;;  %v5013_v9 = vld [vmem:[%s7383_s1 + $0x8] ss:$24 sps:$4 sm:$0xff]   ;;  %v5022_v11 = vld [vmem:[%s7383_s1 + $0x3c] ss:$24 sps:$4 sm:$0xff]  }
  0x1e   : > { %v5017_v12 = vld [vmem:[%s7383_s1 + $0x630] ss:$24 sps:$4 sm:$0xff]   ;;  %v5025_v14 = vld [vmem:[%s7383_s1 + $0x664] ss:$24 sps:$4 sm:$0xff]   ;;  %v5023_v16 = vld [vmem:[%s7383_s1 + $0x660] ss:$24 sps:$4 sm:$0xff]  }
  0x1f   : > { %2336 = vmatpush1.bf16.msra.mxu1 %v4951_v26  ;;  %v5020_v13 = vld [vmem:[%s7383_s1 + $0x38] ss:$24 sps:$4 sm:$0xff]   ;;  %v5028_v15 = vld [vmem:[%s7383_s1 + $0x6c] ss:$24 sps:$4 sm:$0xff]   ;;  %v5026_v17 = vld [vmem:[%s7383_s1 + $0x68] ss:$24 sps:$4 sm:$0xff]  }
  0x20   : > { %2377 = vmatpush1.bf16.msra.mxu0 %v4952_v27  ;;  %2337 = vmatprep.subr.bf16.mxu1 %v4953_v28  ;;  %v5031_v18 = vld [vmem:[%s7383_s1 + $0x694] ss:$24 sps:$4 sm:$0xff]   ;;  %v5029_v20 = vld [vmem:[%s7383_s1 + $0x690] ss:$24 sps:$4 sm:$0xff]   ;;  %v5037_v22 = vld [vmem:[%s7383_s1 + $0x6c4] ss:$24 sps:$4 sm:$0xff]  }
  0x21   : > { %2378 = vmatprep.subr.bf16.mxu0 %v4955_v29  ;;  %v5034_v19 = vld [vmem:[%s7383_s1 + $0x9c] ss:$24 sps:$4 sm:$0xff]   ;;  %v5032_v21 = vld [vmem:[%s7383_s1 + $0x98] ss:$24 sps:$4 sm:$0xff]   ;;  %v5040_v23 = vld [vmem:[%s7383_s1 + $0xcc] ss:$24 sps:$4 sm:$0xff]  }
  0x22   : > { %v5035_v24 = vld [vmem:[%s7383_s1 + $0x6c0] ss:$24 sps:$4 sm:$0xff]   ;;  %v5043_v26 = vld [vmem:[%s7383_s1 + $0x6f4] ss:$24 sps:$4 sm:$0xff]   ;;  %v5041_v28 = vld [vmem:[%s7383_s1 + $0x6f0] ss:$24 sps:$4 sm:$0xff]  }
  0x23   : > { %2338 = vmatpush1.bf16.msra.mxu1 %v4957_v30  ;;  %v5038_v25 = vld [vmem:[%s7383_s1 + $0xc8] ss:$24 sps:$4 sm:$0xff]   ;;  %v5046_v27 = vld [vmem:[%s7383_s1 + $0xfc] ss:$24 sps:$4 sm:$0xff]   ;;  %v5044_v29 = vld [vmem:[%s7383_s1 + $0xf8] ss:$24 sps:$4 sm:$0xff]  }
  0x24   : > { %2379 = vmatpush1.bf16.msra.mxu0 %v4958_v31  ;;  %2339 = vmatprep.subr.bf16.mxu1 %v4959_v32  ;;  %v5049_v30 = vld [vmem:[%s7383_s1 + $0x724] ss:$24 sps:$4 sm:$0xff]   ;;  %v6039_v32 = vld [vmem:[%s5883_s10 + $0x10] sm:$0xff] }
  0x25   : > { %2380 = vmatprep.subr.bf16.mxu0 %v4961_v33  ;;  %v5052_v31 = vld [vmem:[%s7383_s1 + $0x12c] ss:$24 sps:$4 sm:$0xff]   ;;  %v5047_v33 = vld [vmem:[%s7383_s1 + $0x720] ss:$24 sps:$4 sm:$0xff]   ;;  %v5065_v46 = vld [vmem:[%s7383_s1 + $0x7b0] ss:$24 sps:$4 sm:$0xff]  }
  0x26   : > { %v5068_v48 = vld [vmem:[%s7383_s1 + $0x1b8] ss:$24 sps:$4 sm:$0xff]  }
  0x27   : > { %2340 = vmatpush1.bf16.msra.mxu1 %v4963_v34  ;;  %v6046_v34 = vcombine.high %v6039_v32, %v6039_v32 }
  0x28   : > { %2381 = vmatpush1.bf16.msra.mxu0 %v4964_v35  ;;  %2341 = vmatprep.subr.bf16.mxu1 %v4965_v36  ;;  %v5050_v35 = vld [vmem:[%s7383_s1 + $0x128] ss:$24 sps:$4 sm:$0xff]   ;;  %v5055_v36 = vld [vmem:[%s7383_s1 + $0x754] ss:$24 sps:$4 sm:$0xff]  }
  0x29   : > { %2382 = vmatprep.subr.bf16.mxu0 %v4967_v37  ;;  %v5058_v37 = vld [vmem:[%s7383_s1 + $0x15c] ss:$24 sps:$4 sm:$0xff]  }
  0x2b   : > { %2342 = vmatpush1.bf16.msra.mxu1 %v4969_v38  ;;  %v5053_v38 = vld [vmem:[%s7383_s1 + $0x750] ss:$24 sps:$4 sm:$0xff]  }
  0x2c   : > { %2383 = vmatpush1.bf16.msra.mxu0 %v4970_v39  ;;  %2343 = vmatprep.subr.bf16.mxu1 %v4971_v40  ;;  %v5056_v39 = vld [vmem:[%s7383_s1 + $0x158] ss:$24 sps:$4 sm:$0xff]   ;;  %v5061_v40 = vld [vmem:[%s7383_s1 + $0x784] ss:$24 sps:$4 sm:$0xff]  }
  0x2d   : > { %2384 = vmatprep.subr.bf16.mxu0 %v4973_v41  ;;  %v5064_v41 = vld [vmem:[%s7383_s1 + $0x18c] ss:$24 sps:$4 sm:$0xff]  }
  0x2f   : > { %2344 = vmatpush1.bf16.msra.mxu1 %v4975_v42  ;;  %v5059_v42 = vld [vmem:[%s7383_s1 + $0x780] ss:$24 sps:$4 sm:$0xff]  }
  0x30   : > { %2385 = vmatpush1.bf16.msra.mxu0 %v4976_v43  ;;  %2345 = vmatprep.subr.bf16.mxu1 %v4977_v44  ;;  %v5062_v43 = vld [vmem:[%s7383_s1 + $0x188] ss:$24 sps:$4 sm:$0xff]   ;;  %v5067_v44 = vld [vmem:[%s7383_s1 + $0x7b4] ss:$24 sps:$4 sm:$0xff]  }
  0x31   : > { %2386 = vmatprep.subr.bf16.mxu0 %v4979_v45  ;;  %v5070_v45 = vld [vmem:[%s7383_s1 + $0x1bc] ss:$24 sps:$4 sm:$0xff]  }
  0x33   : > { %2346 = vmatpush1.bf16.msra.mxu1 %v4981_v49  ;;  %v5073_v49 = vld [vmem:[%s7383_s1 + $0x7e4] ss:$24 sps:$4 sm:$0xff]  }
  0x34   : > { %2387 = vmatpush1.bf16.msra.mxu0 %v4982_v50  ;;  %2347 = vmatprep.subr.bf16.mxu1 %v4983_v52  ;;  %v5076_v50 = vld [vmem:[%s7383_s1 + $0x1ec] ss:$24 sps:$4 sm:$0xff]   ;;  %v5071_v52 = vld [vmem:[%s7383_s1 + $0x7e0] ss:$24 sps:$4 sm:$0xff]  }
  0x35   : > { %2388 = vmatprep.subr.bf16.mxu0 %v4985_v53  ;;  %v5074_v53 = vld [vmem:[%s7383_s1 + $0x1e8] ss:$24 sps:$4 sm:$0xff]  }
  0x37   : > { %2348 = vmatpush1.bf16.msra.mxu1 %v4987_v54  ;;  %v5079_v54 = vld [vmem:[%s7383_s1 + $0x814] ss:$24 sps:$4 sm:$0xff]  }
  0x38   : > { %2389 = vmatpush1.bf16.msra.mxu0 %v4988_v55  ;;  %2349 = vmatprep.subr.bf16.mxu1 %v4989_v56  ;;  %v5082_v55 = vld [vmem:[%s7383_s1 + $0x21c] ss:$24 sps:$4 sm:$0xff]   ;;  %v5077_v56 = vld [vmem:[%s7383_s1 + $0x810] ss:$24 sps:$4 sm:$0xff]  }
  0x39   : > { %2390 = vmatprep.subr.bf16.mxu0 %v4991_v57  ;;  %v5080_v57 = vld [vmem:[%s7383_s1 + $0x218] ss:$24 sps:$4 sm:$0xff]  }
  0x3b   : > { %2350 = vmatpush1.bf16.msra.mxu1 %v4993_v58  ;;  %v5085_v58 = vld [vmem:[%s7383_s1 + $0x844] ss:$24 sps:$4 sm:$0xff]  }
  0x3c   : > { %2391 = vmatpush1.bf16.msra.mxu0 %v4994_v59  ;;  %2351 = vmatprep.subr.bf16.mxu1 %v4995_v60  ;;  %v5088_v59 = vld [vmem:[%s7383_s1 + $0x24c] ss:$24 sps:$4 sm:$0xff]   ;;  %v5083_v60 = vld [vmem:[%s7383_s1 + $0x840] ss:$24 sps:$4 sm:$0xff]  }
  0x3d   : > { %2392 = vmatprep.subr.bf16.mxu0 %v4997_v61  ;;  %v5086_v61 = vld [vmem:[%s7383_s1 + $0x248] ss:$24 sps:$4 sm:$0xff]  }
  0x3f   : > { %2352 = vmatpush1.bf16.msra.mxu1 %v4999_v62  ;;  %v5091_v62 = vld [vmem:[%s7383_s1 + $0x874] ss:$24 sps:$4 sm:$0xff]  }
  0x40   : > { %2393 = vmatpush1.bf16.msra.mxu0 %v5000_v63  ;;  %2353 = vmatprep.subr.bf16.mxu1 %v5001_v0  ;;  %v5094_v63 = vld [vmem:[%s7383_s1 + $0x27c] ss:$24 sps:$4 sm:$0xff]   ;;  %v5089_v0 = vld [vmem:[%s7383_s1 + $0x870] ss:$24 sps:$4 sm:$0xff]  }
  0x41   : > { %2394 = vmatprep.subr.bf16.mxu0 %v5003_v1  ;;  %v5092_v1 = vld [vmem:[%s7383_s1 + $0x278] ss:$24 sps:$4 sm:$0xff]  }
  0x43   : > { %2354 = vmatpush1.bf16.msra.mxu1 %v5005_v2  ;;  %v5097_v2 = vld [vmem:[%s7383_s1 + $0x8a4] ss:$24 sps:$4 sm:$0xff]  }
  0x44   : > { %2395 = vmatpush1.bf16.msra.mxu0 %v5006_v3  ;;  %2446 = vmatprep.subr.bf16.mxu1 %v5015_v5  ;;  %v5100_v3 = vld [vmem:[%s7383_s1 + $0x2ac] ss:$24 sps:$4 sm:$0xff]   ;;  %v5098_v5 = vld [vmem:[%s7383_s1 + $0x2a8] ss:$24 sps:$4 sm:$0xff]  }
  0x45   : > { %2405 = vmatprep.subr.bf16.mxu0 %v5012_v4  ;;  %v5095_v4 = vld [vmem:[%s7383_s1 + $0x8a0] ss:$24 sps:$4 sm:$0xff]  }
  0x46   : > { %2356 = vmatmul.mubr.bf16.vlgmr.msra.gmra.mrb[0].mxu1 %v5959_v6 }
  0x47   : > { %2397 = vmatmul.mubr.bf16.vlgmr.msra.gmra.mrb[0].mxu0 %v5961_v7  ;;  %2447 = vmatpush1.bf16.msra.mxu1 %v5013_v9  ;;  %v5106_v9 = vld [vmem:[%s7383_s1 + $0x2dc] ss:$24 sps:$4 sm:$0xff]  }
  0x48   : > { %2406 = vmatpush1.bf16.msra.mxu0 %v5010_v8  ;;  %2448 = vmatprep.subr.bf16.mxu1 %v5022_v11  ;;  %v5103_v8 = vld [vmem:[%s7383_s1 + $0x8d4] ss:$24 sps:$4 sm:$0xff]   ;;  %v5104_v11 = vld [vmem:[%s7383_s1 + $0x2d8] ss:$24 sps:$4 sm:$0xff]  }
  0x49   : > { %2407 = vmatprep.subr.bf16.mxu0 %v5019_v10  ;;  %2478 = vmatprep.mubr.bf16.mxu1 %v5892_v47  ;;  %v5101_v10 = vld [vmem:[%s7383_s1 + $0x8d0] ss:$24 sps:$4 sm:$0xff]  }
  0x4a   : > { %2437 = vmatprep.mubr.bf16.mxu0 %v6046_v34 }
  0x4b   : > { %2449 = vmatpush1.bf16.msra.mxu1 %v5020_v13  ;;  %v5114_v13 = vld [vmem:[%s7383_s1 + $0x14] ss:$24 sps:$4 sm:$0xff]  }
  0x4c   : > { %2408 = vmatpush1.bf16.msra.mxu0 %v5017_v12  ;;  %2450 = vmatprep.subr.bf16.mxu1 %v5028_v15  ;;  %v5111_v12 = vld [vmem:[%s7383_s1 + $0x30c] ss:$24 sps:$4 sm:$0xff]   ;;  %v5109_v15 = vld [vmem:[%s7383_s1 + $0x308] ss:$24 sps:$4 sm:$0xff]  }
  0x4d   : > { %2409 = vmatprep.subr.bf16.mxu0 %v5025_v14  ;;  %v6168_v14 = vcombine.low %v6039_v32, %v6039_v32  ;;  %v5141_v32 = vld [vmem:[%s7383_s1 + $0x3fc] ss:$24 sps:$4 sm:$0xff]  }
  0x4f   : > { %2451 = vmatpush1.bf16.msra.mxu1 %v5026_v17  ;;  %v5117_v17 = vld [vmem:[%s7383_s1 + $0x33c] ss:$24 sps:$4 sm:$0xff]  }
  0x50   : > { %2410 = vmatpush1.bf16.msra.mxu0 %v5023_v16  ;;  %2452 = vmatprep.subr.bf16.mxu1 %v5034_v19  ;;  %v5112_v16 = vld [vmem:[%s7383_s1 + $0x10] ss:$24 sps:$4 sm:$0xff]  }
  0x51   : > { %2411 = vmatprep.subr.bf16.mxu0 %v5031_v18  ;;  %v5120_v18 = vld [vmem:[%s7383_s1 + $0x44] ss:$24 sps:$4 sm:$0xff]   ;;  %v5115_v19 = vld [vmem:[%s7383_s1 + $0x338] ss:$24 sps:$4 sm:$0xff]  }
  0x53   : > { %2453 = vmatpush1.bf16.msra.mxu1 %v5032_v21  ;;  %v5123_v21 = vld [vmem:[%s7383_s1 + $0x36c] ss:$24 sps:$4 sm:$0xff]  }
  0x54   : > { %2412 = vmatpush1.bf16.msra.mxu0 %v5029_v20  ;;  %2454 = vmatprep.subr.bf16.mxu1 %v5040_v23  ;;  %v5118_v20 = vld [vmem:[%s7383_s1 + $0x40] ss:$24 sps:$4 sm:$0xff]  }
  0x55   : > { %2413 = vmatprep.subr.bf16.mxu0 %v5037_v22  ;;  %v5126_v22 = vld [vmem:[%s7383_s1 + $0x74] ss:$24 sps:$4 sm:$0xff]   ;;  %v5121_v23 = vld [vmem:[%s7383_s1 + $0x368] ss:$24 sps:$4 sm:$0xff]  }
  0x57   : > { %2455 = vmatpush1.bf16.msra.mxu1 %v5038_v25  ;;  %v5129_v25 = vld [vmem:[%s7383_s1 + $0x39c] ss:$24 sps:$4 sm:$0xff]  }
  0x58   : > { %2414 = vmatpush1.bf16.msra.mxu0 %v5035_v24  ;;  %2456 = vmatprep.subr.bf16.mxu1 %v5046_v27  ;;  %v5124_v24 = vld [vmem:[%s7383_s1 + $0x70] ss:$24 sps:$4 sm:$0xff]   ;;  %v5130_v27 = vld [vmem:[%s7383_s1 + $0xa0] ss:$24 sps:$4 sm:$0xff]  }
  0x59   : > { %2415 = vmatprep.subr.bf16.mxu0 %v5043_v26  ;;  %v5127_v26 = vld [vmem:[%s7383_s1 + $0x398] ss:$24 sps:$4 sm:$0xff]  }
  0x5b   : > { %2457 = vmatpush1.bf16.msra.mxu1 %v5044_v29  ;;  %v5138_v29 = vld [vmem:[%s7383_s1 + $0xd4] ss:$24 sps:$4 sm:$0xff]  }
  0x5c   : > { %2416 = vmatpush1.bf16.msra.mxu0 %v5041_v28  ;;  %2458 = vmatprep.subr.bf16.mxu1 %v5052_v31  ;;  %v5135_v28 = vld [vmem:[%s7383_s1 + $0x3cc] ss:$24 sps:$4 sm:$0xff]   ;;  %v5136_v31 = vld [vmem:[%s7383_s1 + $0xd0] ss:$24 sps:$4 sm:$0xff]  }
  0x5d   : > { %2417 = vmatprep.subr.bf16.mxu0 %v5049_v30  ;;  %v5133_v30 = vld [vmem:[%s7383_s1 + $0x3c8] ss:$24 sps:$4 sm:$0xff]  }
  0x5f   : > { %2459 = vmatpush1.bf16.msra.mxu1 %v5050_v35  ;;  %v5139_v35 = vld [vmem:[%s7383_s1 + $0x3f8] ss:$24 sps:$4 sm:$0xff]  }
  0x60   : > { %2418 = vmatpush1.bf16.msra.mxu0 %v5047_v33  ;;  %2460 = vmatprep.subr.bf16.mxu1 %v5058_v37  ;;  %v5144_v33 = vld [vmem:[%s7383_s1 + $0x104] ss:$24 sps:$4 sm:$0xff]  }
  0x61   : > { %2419 = vmatprep.subr.bf16.mxu0 %v5055_v36  ;;  %v5142_v36 = vld [vmem:[%s7383_s1 + $0x100] ss:$24 sps:$4 sm:$0xff]   ;;  %v5147_v37 = vld [vmem:[%s7383_s1 + $0x42c] ss:$24 sps:$4 sm:$0xff]  }
  0x63   : > { %2461 = vmatpush1.bf16.msra.mxu1 %v5056_v39  ;;  %v5145_v39 = vld [vmem:[%s7383_s1 + $0x428] ss:$24 sps:$4 sm:$0xff]  }
  0x64   : > { %2420 = vmatpush1.bf16.msra.mxu0 %v5053_v38  ;;  %2462 = vmatprep.subr.bf16.mxu1 %v5064_v41  ;;  %v5150_v38 = vld [vmem:[%s7383_s1 + $0x134] ss:$24 sps:$4 sm:$0xff]  }
  0x65   : > { %2421 = vmatprep.subr.bf16.mxu0 %v5061_v40  ;;  %v5148_v40 = vld [vmem:[%s7383_s1 + $0x130] ss:$24 sps:$4 sm:$0xff]   ;;  %v5153_v41 = vld [vmem:[%s7383_s1 + $0x45c] ss:$24 sps:$4 sm:$0xff]  }
  0x67   : > { %2463 = vmatpush1.bf16.msra.mxu1 %v5062_v43  ;;  %v5151_v43 = vld [vmem:[%s7383_s1 + $0x458] ss:$24 sps:$4 sm:$0xff]  }
  0x68   : > { %2422 = vmatpush1.bf16.msra.mxu0 %v5059_v42  ;;  %2464 = vmatprep.subr.bf16.mxu1 %v5070_v45  ;;  %v5156_v42 = vld [vmem:[%s7383_s1 + $0x164] ss:$24 sps:$4 sm:$0xff]  }
  0x69   : > { %2423 = vmatprep.subr.bf16.mxu0 %v5067_v44  ;;  %v5154_v44 = vld [vmem:[%s7383_s1 + $0x160] ss:$24 sps:$4 sm:$0xff]   ;;  %v5159_v45 = vld [vmem:[%s7383_s1 + $0x48c] ss:$24 sps:$4 sm:$0xff]  }
  0x6b   : > { %2465 = vmatpush1.bf16.msra.mxu1 %v5068_v48  ;;  %v5157_v48 = vld [vmem:[%s7383_s1 + $0x488] ss:$24 sps:$4 sm:$0xff]  }
  0x6c   : > { %2424 = vmatpush1.bf16.msra.mxu0 %v5065_v46  ;;  %2466 = vmatprep.subr.bf16.mxu1 %v5076_v50  ;;  %v5162_v46 = vld [vmem:[%s7383_s1 + $0x194] ss:$24 sps:$4 sm:$0xff]  }
  0x6d   : > { %2425 = vmatprep.subr.bf16.mxu0 %v5073_v49  ;;  %v5160_v49 = vld [vmem:[%s7383_s1 + $0x190] ss:$24 sps:$4 sm:$0xff]   ;;  %v5165_v50 = vld [vmem:[%s7383_s1 + $0x4bc] ss:$24 sps:$4 sm:$0xff]  }
  0x6f   : > { %2467 = vmatpush1.bf16.msra.mxu1 %v5074_v53  ;;  %v5163_v53 = vld [vmem:[%s7383_s1 + $0x4b8] ss:$24 sps:$4 sm:$0xff]  }
  0x70   : > { %2426 = vmatpush1.bf16.msra.mxu0 %v5071_v52  ;;  %2468 = vmatprep.subr.bf16.mxu1 %v5082_v55  ;;  %v5168_v52 = vld [vmem:[%s7383_s1 + $0x1c4] ss:$24 sps:$4 sm:$0xff]  }
  0x71   : > { %2427 = vmatprep.subr.bf16.mxu0 %v5079_v54  ;;  %v5166_v54 = vld [vmem:[%s7383_s1 + $0x1c0] ss:$24 sps:$4 sm:$0xff]   ;;  %v5171_v55 = vld [vmem:[%s7383_s1 + $0x4ec] ss:$24 sps:$4 sm:$0xff]  }
  0x73   : > { %2469 = vmatpush1.bf16.msra.mxu1 %v5080_v57  ;;  %v5169_v57 = vld [vmem:[%s7383_s1 + $0x4e8] ss:$24 sps:$4 sm:$0xff]  }
  0x74   : > { %2428 = vmatpush1.bf16.msra.mxu0 %v5077_v56  ;;  %2470 = vmatprep.subr.bf16.mxu1 %v5088_v59  ;;  %v5174_v56 = vld [vmem:[%s7383_s1 + $0x1f4] ss:$24 sps:$4 sm:$0xff]  }
  0x75   : > { %2429 = vmatprep.subr.bf16.mxu0 %v5085_v58  ;;  %v5172_v58 = vld [vmem:[%s7383_s1 + $0x1f0] ss:$24 sps:$4 sm:$0xff]   ;;  %v5177_v59 = vld [vmem:[%s7383_s1 + $0x51c] ss:$24 sps:$4 sm:$0xff]  }
  0x77   : > { %2471 = vmatpush1.bf16.msra.mxu1 %v5086_v61  ;;  %v5175_v61 = vld [vmem:[%s7383_s1 + $0x518] ss:$24 sps:$4 sm:$0xff]  }
  0x78   : > { %2430 = vmatpush1.bf16.msra.mxu0 %v5083_v60  ;;  %2472 = vmatprep.subr.bf16.mxu1 %v5094_v63  ;;  %v5180_v60 = vld [vmem:[%s7383_s1 + $0x224] ss:$24 sps:$4 sm:$0xff]  }
  0x79   : > { %2431 = vmatprep.subr.bf16.mxu0 %v5091_v62  ;;  %v5178_v62 = vld [vmem:[%s7383_s1 + $0x220] ss:$24 sps:$4 sm:$0xff]   ;;  %v5183_v63 = vld [vmem:[%s7383_s1 + $0x54c] ss:$24 sps:$4 sm:$0xff]  }
  0x7b   : > { %2473 = vmatpush1.bf16.msra.mxu1 %v5092_v1  ;;  %v5181_v1 = vld [vmem:[%s7383_s1 + $0x548] ss:$24 sps:$4 sm:$0xff]  }
  0x7c   : > { %2432 = vmatpush1.bf16.msra.mxu0 %v5089_v0  ;;  %2474 = vmatprep.subr.bf16.mxu1 %v5100_v3  ;;  %v5186_v0 = vld [vmem:[%s7383_s1 + $0x254] ss:$24 sps:$4 sm:$0xff]  }
  0x7d   : > { %2433 = vmatprep.subr.bf16.mxu0 %v5097_v2  ;;  %v5184_v2 = vld [vmem:[%s7383_s1 + $0x250] ss:$24 sps:$4 sm:$0xff]   ;;  %v5189_v3 = vld [vmem:[%s7383_s1 + $0x57c] ss:$24 sps:$4 sm:$0xff]  }
  0x7f   : > { %2475 = vmatpush1.bf16.msra.mxu1 %v5098_v5  ;;  %v5187_v5 = vld [vmem:[%s7383_s1 + $0x578] ss:$24 sps:$4 sm:$0xff]  }
  0x80   : > { %2434 = vmatpush1.bf16.msra.mxu0 %v5095_v4  ;;  %2476 = vmatprep.subr.bf16.mxu1 %v5106_v9  ;;  %v5192_v4 = vld [vmem:[%s7383_s1 + $0x284] ss:$24 sps:$4 sm:$0xff]  }
  0x81   : > { %2435 = vmatprep.subr.bf16.mxu0 %v5103_v8  ;;  %v5190_v8 = vld [vmem:[%s7383_s1 + $0x280] ss:$24 sps:$4 sm:$0xff]   ;;  %v5195_v9 = vld [vmem:[%s7383_s1 + $0x5ac] ss:$24 sps:$4 sm:$0xff]  }
  0x83   : > { %2477 = vmatpush1.bf16.msra.mxu1 %v5104_v11  ;;  %v5193_v11 = vld [vmem:[%s7383_s1 + $0x5a8] ss:$24 sps:$4 sm:$0xff]  }
  0x84   : > { %2436 = vmatpush1.bf16.msra.mxu0 %v5101_v10  ;;  %2487 = vmatprep.subr.bf16.mxu1 %v5111_v12  ;;  %v5198_v10 = vld [vmem:[%s7383_s1 + $0x2b4] ss:$24 sps:$4 sm:$0xff]   ;;  %v5196_v12 = vld [vmem:[%s7383_s1 + $0x2b0] ss:$24 sps:$4 sm:$0xff]  }
  0x85   : > { %2569 = vmatprep.subr.bf16.mxu0 %v5114_v13  ;;  %v5201_v13 = vld [vmem:[%s7383_s1 + $0x5dc] ss:$24 sps:$4 sm:$0xff]  }
  0x86   : > { %2479 = vmatmul.mubr.bf16.vlgmr.msra.gmra.mrb[4].mxu1 %v5959_v6 }
  0x87   : > { %2438 = vmatmul.mubr.bf16.vlgmr.msra.gmra.mrb[0].mxu0 %v6168_v14  ;;  %2488 = vmatpush1.bf16.msra.mxu1 %v5109_v15  ;;  %v5204_v15 = vld [vmem:[%s7383_s1 + $0x2e4] ss:$24 sps:$4 sm:$0xff]  }
  0x88   : > { %2570 = vmatpush1.bf16.msra.mxu0 %v5112_v16  ;;  %2489 = vmatprep.subr.bf16.mxu1 %v5117_v17  ;;  %v5199_v16 = vld [vmem:[%s7383_s1 + $0x5d8] ss:$24 sps:$4 sm:$0xff]  }
  0x89   : > { %2571 = vmatprep.subr.bf16.mxu0 %v5120_v18  ;;  %2519 = vmatprep.mubr.bf16.mxu1 %v5901_v51  ;;  %v5202_v17 = vld [vmem:[%s7383_s1 + $0x2e0] ss:$24 sps:$4 sm:$0xff]   ;;  %v5207_v18 = vld [vmem:[%s7383_s1 + $0x60c] ss:$24 sps:$4 sm:$0xff]  }
  0x8a   : > { %2601 = vmatprep.mubr.bf16.mxu0 %v5892_v47  ;;  %v5132_v47 = vld [vmem:[%s7383_s1 + $0xa4] ss:$24 sps:$4 sm:$0xff]  }
  0x8b   : > { %2490 = vmatpush1.bf16.msra.mxu1 %v5115_v19  ;;  %v5210_v19 = vld [vmem:[%s7383_s1 + $0x314] ss:$24 sps:$4 sm:$0xff]  }
  0x8c   : > { %2572 = vmatpush1.bf16.msra.mxu0 %v5118_v20  ;;  %2491 = vmatprep.subr.bf16.mxu1 %v5123_v21  ;;  %v5205_v20 = vld [vmem:[%s7383_s1 + $0x608] ss:$24 sps:$4 sm:$0xff]  }
  0x8d   : > { %2573 = vmatprep.subr.bf16.mxu0 %v5126_v22  ;;  %v5208_v21 = vld [vmem:[%s7383_s1 + $0x310] ss:$24 sps:$4 sm:$0xff]   ;;  %v5213_v22 = vld [vmem:[%s7383_s1 + $0x63c] ss:$24 sps:$4 sm:$0xff]  }
  0x8f   : > { %2492 = vmatpush1.bf16.msra.mxu1 %v5121_v23  ;;  %v5216_v23 = vld [vmem:[%s7383_s1 + $0x344] ss:$24 sps:$4 sm:$0xff]  }
  0x90   : > { %2574 = vmatpush1.bf16.msra.mxu0 %v5124_v24  ;;  %2493 = vmatprep.subr.bf16.mxu1 %v5129_v25  ;;  %v5211_v24 = vld [vmem:[%s7383_s1 + $0x638] ss:$24 sps:$4 sm:$0xff]  }
  0x91   : > { %2575 = vmatprep.subr.bf16.mxu0 %v5132_v47  ;;  %v5214_v25 = vld [vmem:[%s7383_s1 + $0x340] ss:$24 sps:$4 sm:$0xff]   ;;  %v5219_v47 = vld [vmem:[%s7383_s1 + $0x66c] ss:$24 sps:$4 sm:$0xff]  }
  0x93   : > { %2494 = vmatpush1.bf16.msra.mxu1 %v5127_v26  ;;  %v5217_v26 = vld [vmem:[%s7383_s1 + $0x668] ss:$24 sps:$4 sm:$0xff]  }
  0x94   : > { %2576 = vmatpush1.bf16.msra.mxu0 %v5130_v27  ;;  %2495 = vmatprep.subr.bf16.mxu1 %v5135_v28  ;;  %v5220_v27 = vld [vmem:[%s7383_s1 + $0x370] ss:$24 sps:$4 sm:$0xff]   ;;  %v5225_v28 = vld [vmem:[%s7383_s1 + $0x69c] ss:$24 sps:$4 sm:$0xff]  }
  0x95   : > { %2577 = vmatprep.subr.bf16.mxu0 %v5138_v29  ;;  %v5223_v29 = vld [vmem:[%s7383_s1 + $0x698] ss:$24 sps:$4 sm:$0xff]  }
  0x97   : > { %2496 = vmatpush1.bf16.msra.mxu1 %v5133_v30  ;;  %v5226_v30 = vld [vmem:[%s7383_s1 + $0x3a0] ss:$24 sps:$4 sm:$0xff]  }
  0x98   : > { %2578 = vmatpush1.bf16.msra.mxu0 %v5136_v31  ;;  %2497 = vmatprep.subr.bf16.mxu1 %v5141_v32  ;;  %v5231_v31 = vld [vmem:[%s7383_s1 + $0x6cc] ss:$24 sps:$4 sm:$0xff]  }
  0x99   : > { %2579 = vmatprep.subr.bf16.mxu0 %v5144_v33  ;;  %v5234_v32 = vld [vmem:[%s7383_s1 + $0x3d4] ss:$24 sps:$4 sm:$0xff]   ;;  %v5229_v33 = vld [vmem:[%s7383_s1 + $0x6c8] ss:$24 sps:$4 sm:$0xff]  }
  0x9b   : > { %2498 = vmatpush1.bf16.msra.mxu1 %v5139_v35  ;;  %v5232_v35 = vld [vmem:[%s7383_s1 + $0x3d0] ss:$24 sps:$4 sm:$0xff]  }
  0x9c   : > { %2580 = vmatpush1.bf16.msra.mxu0 %v5142_v36  ;;  %2499 = vmatprep.subr.bf16.mxu1 %v5147_v37  ;;  %v5237_v36 = vld [vmem:[%s7383_s1 + $0x6fc] ss:$24 sps:$4 sm:$0xff]  }
  0x9d   : > { %2581 = vmatprep.subr.bf16.mxu0 %v5150_v38  ;;  %v5240_v37 = vld [vmem:[%s7383_s1 + $0x404] ss:$24 sps:$4 sm:$0xff]   ;;  %v5235_v38 = vld [vmem:[%s7383_s1 + $0x6f8] ss:$24 sps:$4 sm:$0xff]  }
  0x9f   : > { %2500 = vmatpush1.bf16.msra.mxu1 %v5145_v39  ;;  %v5238_v39 = vld [vmem:[%s7383_s1 + $0x400] ss:$24 sps:$4 sm:$0xff]  }
  0xa0   : > { %2582 = vmatpush1.bf16.msra.mxu0 %v5148_v40  ;;  %2501 = vmatprep.subr.bf16.mxu1 %v5153_v41  ;;  %v5243_v40 = vld [vmem:[%s7383_s1 + $0x72c] ss:$24 sps:$4 sm:$0xff]  }
  0xa1   : > { %2583 = vmatprep.subr.bf16.mxu0 %v5156_v42  ;;  %v5246_v41 = vld [vmem:[%s7383_s1 + $0x434] ss:$24 sps:$4 sm:$0xff]   ;;  %v5241_v42 = vld [vmem:[%s7383_s1 + $0x728] ss:$24 sps:$4 sm:$0xff]  }
  0xa3   : > { %2502 = vmatpush1.bf16.msra.mxu1 %v5151_v43  ;;  %v5244_v43 = vld [vmem:[%s7383_s1 + $0x430] ss:$24 sps:$4 sm:$0xff]  }
  0xa4   : > { %2584 = vmatpush1.bf16.msra.mxu0 %v5154_v44  ;;  %2503 = vmatprep.subr.bf16.mxu1 %v5159_v45  ;;  %v5249_v44 = vld [vmem:[%s7383_s1 + $0x75c] ss:$24 sps:$4 sm:$0xff]  }
  0xa5   : > { %2585 = vmatprep.subr.bf16.mxu0 %v5162_v46  ;;  %v5252_v45 = vld [vmem:[%s7383_s1 + $0x464] ss:$24 sps:$4 sm:$0xff]   ;;  %v5247_v46 = vld [vmem:[%s7383_s1 + $0x758] ss:$24 sps:$4 sm:$0xff]  }
  0xa7   : > { %2504 = vmatpush1.bf16.msra.mxu1 %v5157_v48  ;;  %v5250_v48 = vld [vmem:[%s7383_s1 + $0x460] ss:$24 sps:$4 sm:$0xff]  }
  0xa8   : > { %2586 = vmatpush1.bf16.msra.mxu0 %v5160_v49  ;;  %2505 = vmatprep.subr.bf16.mxu1 %v5165_v50  ;;  %v5255_v49 = vld [vmem:[%s7383_s1 + $0x78c] ss:$24 sps:$4 sm:$0xff]  }
  0xa9   : > { %2587 = vmatprep.subr.bf16.mxu0 %v5168_v52  ;;  %v5258_v50 = vld [vmem:[%s7383_s1 + $0x494] ss:$24 sps:$4 sm:$0xff]   ;;  %v5253_v52 = vld [vmem:[%s7383_s1 + $0x788] ss:$24 sps:$4 sm:$0xff]  }
  0xab   : > { %2506 = vmatpush1.bf16.msra.mxu1 %v5163_v53  ;;  %v5256_v53 = vld [vmem:[%s7383_s1 + $0x490] ss:$24 sps:$4 sm:$0xff]  }
  0xac   : > { %2588 = vmatpush1.bf16.msra.mxu0 %v5166_v54  ;;  %2507 = vmatprep.subr.bf16.mxu1 %v5171_v55  ;;  %v5261_v54 = vld [vmem:[%s7383_s1 + $0x7bc] ss:$24 sps:$4 sm:$0xff]  }
  0xad   : > { %2589 = vmatprep.subr.bf16.mxu0 %v5174_v56  ;;  %v5264_v55 = vld [vmem:[%s7383_s1 + $0x4c4] ss:$24 sps:$4 sm:$0xff]   ;;  %v5259_v56 = vld [vmem:[%s7383_s1 + $0x7b8] ss:$24 sps:$4 sm:$0xff]  }
  0xaf   : > { %2508 = vmatpush1.bf16.msra.mxu1 %v5169_v57  ;;  %v5262_v57 = vld [vmem:[%s7383_s1 + $0x4c0] ss:$24 sps:$4 sm:$0xff]  }
  0xb0   : > { %2590 = vmatpush1.bf16.msra.mxu0 %v5172_v58  ;;  %2509 = vmatprep.subr.bf16.mxu1 %v5177_v59  ;;  %v5267_v58 = vld [vmem:[%s7383_s1 + $0x7ec] ss:$24 sps:$4 sm:$0xff]  }
  0xb1   : > { %2591 = vmatprep.subr.bf16.mxu0 %v5180_v60  ;;  %v5270_v59 = vld [vmem:[%s7383_s1 + $0x4f4] ss:$24 sps:$4 sm:$0xff]   ;;  %v5265_v60 = vld [vmem:[%s7383_s1 + $0x7e8] ss:$24 sps:$4 sm:$0xff]  }
  0xb3   : > { %2510 = vmatpush1.bf16.msra.mxu1 %v5175_v61  ;;  %v5268_v61 = vld [vmem:[%s7383_s1 + $0x4f0] ss:$24 sps:$4 sm:$0xff]  }
  0xb4   : > { %2592 = vmatpush1.bf16.msra.mxu0 %v5178_v62  ;;  %2511 = vmatprep.subr.bf16.mxu1 %v5183_v63  ;;  %v5273_v62 = vld [vmem:[%s7383_s1 + $0x81c] ss:$24 sps:$4 sm:$0xff]  }
  0xb5   : > { %2593 = vmatprep.subr.bf16.mxu0 %v5186_v0  ;;  %v5276_v63 = vld [vmem:[%s7383_s1 + $0x524] ss:$24 sps:$4 sm:$0xff]   ;;  %v5271_v0 = vld [vmem:[%s7383_s1 + $0x818] ss:$24 sps:$4 sm:$0xff]  }
  0xb7   : > { %2512 = vmatpush1.bf16.msra.mxu1 %v5181_v1  ;;  %v5274_v1 = vld [vmem:[%s7383_s1 + $0x520] ss:$24 sps:$4 sm:$0xff]  }
  0xb8   : > { %2594 = vmatpush1.bf16.msra.mxu0 %v5184_v2  ;;  %2513 = vmatprep.subr.bf16.mxu1 %v5189_v3  ;;  %v5279_v2 = vld [vmem:[%s7383_s1 + $0x84c] ss:$24 sps:$4 sm:$0xff]  }
  0xb9   : > { %2595 = vmatprep.subr.bf16.mxu0 %v5192_v4  ;;  %v5282_v3 = vld [vmem:[%s7383_s1 + $0x554] ss:$24 sps:$4 sm:$0xff]   ;;  %v5277_v4 = vld [vmem:[%s7383_s1 + $0x848] ss:$24 sps:$4 sm:$0xff]  }
  0xbb   : > { %2514 = vmatpush1.bf16.msra.mxu1 %v5187_v5  ;;  %v5280_v5 = vld [vmem:[%s7383_s1 + $0x550] ss:$24 sps:$4 sm:$0xff]  }
  0xbc   : > { %2596 = vmatpush1.bf16.msra.mxu0 %v5190_v8  ;;  %2515 = vmatprep.subr.bf16.mxu1 %v5195_v9  ;;  %v5285_v8 = vld [vmem:[%s7383_s1 + $0x87c] ss:$24 sps:$4 sm:$0xff]  }
  0xbd   : > { %2597 = vmatprep.subr.bf16.mxu0 %v5198_v10  ;;  %v5288_v9 = vld [vmem:[%s7383_s1 + $0x584] ss:$24 sps:$4 sm:$0xff]   ;;  %v5283_v10 = vld [vmem:[%s7383_s1 + $0x878] ss:$24 sps:$4 sm:$0xff]  }
  0xbf   : > { %2516 = vmatpush1.bf16.msra.mxu1 %v5193_v11  ;;  %v5286_v11 = vld [vmem:[%s7383_s1 + $0x580] ss:$24 sps:$4 sm:$0xff]  }
  0xc0   : > { %2598 = vmatpush1.bf16.msra.mxu0 %v5196_v12  ;;  %2517 = vmatprep.subr.bf16.mxu1 %v5201_v13  ;;  %v5291_v12 = vld [vmem:[%s7383_s1 + $0x8ac] ss:$24 sps:$4 sm:$0xff]  }
  0xc1   : > { %2599 = vmatprep.subr.bf16.mxu0 %v5204_v15  ;;  %v5294_v13 = vld [vmem:[%s7383_s1 + $0x5b4] ss:$24 sps:$4 sm:$0xff]   ;;  %v5289_v15 = vld [vmem:[%s7383_s1 + $0x8a8] ss:$24 sps:$4 sm:$0xff]  }
  0xc3   : > { %2518 = vmatpush1.bf16.msra.mxu1 %v5199_v16  ;;  %v5292_v16 = vld [vmem:[%s7383_s1 + $0x5b0] ss:$24 sps:$4 sm:$0xff]  }
  0xc4   : > { %2600 = vmatpush1.bf16.msra.mxu0 %v5202_v17  ;;  %2528 = vmatprep.subr.bf16.mxu1 %v5207_v18  ;;  %v5297_v17 = vld [vmem:[%s7383_s1 + $0x8dc] ss:$24 sps:$4 sm:$0xff]  }
  0xc5   : > { %2610 = vmatprep.subr.bf16.mxu0 %v5210_v19  ;;  %v5300_v18 = vld [vmem:[%s7383_s1 + $0x5e4] ss:$24 sps:$4 sm:$0xff]   ;;  %v5295_v19 = vld [vmem:[%s7383_s1 + $0x8d8] ss:$24 sps:$4 sm:$0xff]  }
  0xc6   : > { %2520 = vmatmul.mubr.bf16.vlgmr.msra.gmra.mrb[4].mxu1 %v5961_v7 }
  0xc7   : > { %2602 = vmatmul.mubr.bf16.vlgmr.msra.gmra.mrb[4].mxu0 %v5959_v6  ;;  %2529 = vmatpush1.bf16.msra.mxu1 %v5205_v20  ;;  %v5222_v6 = vld [vmem:[%s7383_s1 + $0x374] ss:$24 sps:$4 sm:$0xff]   ;;  %v5298_v20 = vld [vmem:[%s7383_s1 + $0x5e0] ss:$24 sps:$4 sm:$0xff]  }
  0xc8   : > { %2611 = vmatpush1.bf16.msra.mxu0 %v5208_v21  ;;  %2530 = vmatprep.subr.bf16.mxu1 %v5213_v22  ;;  %v5303_v21 = vld [vmem:[%s7383_s1 + $0x614] ss:$24 sps:$4 sm:$0xff]  }
  0xc9   : > { %2612 = vmatprep.subr.bf16.mxu0 %v5216_v23  ;;  %2560 = vmatprep.mubr.bf16.mxu1 %v6046_v34  ;;  %v5333_v22 = vld [vmem:[%s7385_s3 + $0x4] ss:$16 sps:$4 sm:$0xff]   ;;  %v5301_v23 = vld [vmem:[%s7383_s1 + $0x610] ss:$24 sps:$4 sm:$0xff]  }
  0xca   : > { %2642 = vmatprep.mubr.bf16.mxu0 %v5901_v51  ;;  %v5228_v51 = vld [vmem:[%s7383_s1 + $0x3a4] ss:$24 sps:$4 sm:$0xff]  }
  0xcb   : > { %2531 = vmatpush1.bf16.msra.mxu1 %v5211_v24  ;;  %v5331_v24 = vld [vmem:[%s7385_s3] ss:$16 sps:$4 sm:$0xff]  }
  0xcc   : > { %2613 = vmatpush1.bf16.msra.mxu0 %v5214_v25  ;;  %2532 = vmatprep.subr.bf16.mxu1 %v5219_v47  ;;  %v5306_v25 = vld [vmem:[%s7383_s1 + $0x644] ss:$24 sps:$4 sm:$0xff]  }
  0xcd   : > { %2614 = vmatprep.subr.bf16.mxu0 %v5222_v6  ;;  %v5339_v47 = vld [vmem:[%s7385_s3 + $0x24] ss:$16 sps:$4 sm:$0xff]   ;;  %v5304_v6 = vld [vmem:[%s7383_s1 + $0x640] ss:$24 sps:$4 sm:$0xff]  }
  0xcf   : > { %2533 = vmatpush1.bf16.msra.mxu1 %v5217_v26  ;;  %v5337_v26 = vld [vmem:[%s7385_s3 + $0x20] ss:$16 sps:$4 sm:$0xff]  }
  0xd0   : > { %2615 = vmatpush1.bf16.msra.mxu0 %v5220_v27  ;;  %2534 = vmatprep.subr.bf16.mxu1 %v5225_v28  ;;  %v5309_v27 = vld [vmem:[%s7383_s1 + $0x674] ss:$24 sps:$4 sm:$0xff]   ;;  %v5307_v28 = vld [vmem:[%s7383_s1 + $0x670] ss:$24 sps:$4 sm:$0xff]  }
  0xd1   : > { %2616 = vmatprep.subr.bf16.mxu0 %v5228_v51  ;;  %v5312_v51 = vld [vmem:[%s7383_s1 + $0x6a4] ss:$24 sps:$4 sm:$0xff]  }
  0xd3   : > { %2535 = vmatpush1.bf16.msra.mxu1 %v5223_v29  ;;  %v5343_v29 = vld [vmem:[%s7385_s3 + $0x40] ss:$16 sps:$4 sm:$0xff]  }
  0xd4   : > { %2617 = vmatpush1.bf16.msra.mxu0 %v5226_v30  ;;  %2536 = vmatprep.subr.bf16.mxu1 %v5231_v31  ;;  %v5310_v30 = vld [vmem:[%s7383_s1 + $0x6a0] ss:$24 sps:$4 sm:$0xff]   ;;  %v5315_v31 = vld [vmem:[%s7383_s1 + $0x6d4] ss:$24 sps:$4 sm:$0xff]  }
  0xd5   : > { %2618 = vmatprep.subr.bf16.mxu0 %v5234_v32  ;;  %v5349_v32 = vld [vmem:[%s7385_s3 + $0x60] ss:$16 sps:$4 sm:$0xff]  }
  0xd7   : > { %2537 = vmatpush1.bf16.msra.mxu1 %v5229_v33  ;;  %v5357_v33 = vld [vmem:[%s7385_s3 + $0x84] ss:$16 sps:$4 sm:$0xff]  }
  0xd8   : > { %2619 = vmatpush1.bf16.msra.mxu0 %v5232_v35  ;;  %2538 = vmatprep.subr.bf16.mxu1 %v5237_v36  ;;  %v5313_v35 = vld [vmem:[%s7383_s1 + $0x6d0] ss:$24 sps:$4 sm:$0xff]   ;;  %v5318_v36 = vld [vmem:[%s7383_s1 + $0x704] ss:$24 sps:$4 sm:$0xff]  }
  0xd9   : > { %2620 = vmatprep.subr.bf16.mxu0 %v5240_v37  ;;  %v5355_v37 = vld [vmem:[%s7385_s3 + $0x80] ss:$16 sps:$4 sm:$0xff]  }
  0xdb   : > { %2539 = vmatpush1.bf16.msra.mxu1 %v5235_v38  ;;  %v5363_v38 = vld [vmem:[%s7385_s3 + $0xa4] ss:$16 sps:$4 sm:$0xff]  }
  0xdc   : > { %2621 = vmatpush1.bf16.msra.mxu0 %v5238_v39  ;;  %2540 = vmatprep.subr.bf16.mxu1 %v5243_v40  ;;  %v5316_v39 = vld [vmem:[%s7383_s1 + $0x700] ss:$24 sps:$4 sm:$0xff]   ;;  %v5321_v40 = vld [vmem:[%s7383_s1 + $0x734] ss:$24 sps:$4 sm:$0xff]  }
  0xdd   : > { %2622 = vmatprep.subr.bf16.mxu0 %v5246_v41  ;;  %v5361_v41 = vld [vmem:[%s7385_s3 + $0xa0] ss:$16 sps:$4 sm:$0xff]  }
  0xdf   : > { %2541 = vmatpush1.bf16.msra.mxu1 %v5241_v42  ;;  %v5369_v42 = vld [vmem:[%s7385_s3 + $0xc4] ss:$16 sps:$4 sm:$0xff]  }
  0xe0   : > { %2623 = vmatpush1.bf16.msra.mxu0 %v5244_v43  ;;  %2542 = vmatprep.subr.bf16.mxu1 %v5249_v44 }
  0xe1   : > { %2624 = vmatprep.subr.bf16.mxu0 %v5252_v45 }
  0xe3   : > { %2543 = vmatpush1.bf16.msra.mxu1 %v5247_v46  ;;  %v5319_v46 = vld [vmem:[%s7383_s1 + $0x730] ss:$24 sps:$4 sm:$0xff]  }
  0xe4   : > { %2625 = vmatpush1.bf16.msra.mxu0 %v5250_v48  ;;  %2544 = vmatprep.subr.bf16.mxu1 %v5255_v49  ;;  %v5367_v48 = vld [vmem:[%s7385_s3 + $0xc0] ss:$16 sps:$4 sm:$0xff]  }
  0xe5   : > { %2626 = vmatprep.subr.bf16.mxu0 %v5258_v50  ;;  %v5324_v50 = vld [vmem:[%s7383_s1 + $0x764] ss:$24 sps:$4 sm:$0xff]  }
  0xe7   : > { %2545 = vmatpush1.bf16.msra.mxu1 %v5253_v52  ;;  %v5375_v52 = vld [vmem:[%s7385_s3 + $0xe4] ss:$16 sps:$4 sm:$0xff]  }
  0xe8   : > { %2627 = vmatpush1.bf16.msra.mxu0 %v5256_v53  ;;  %2546 = vmatprep.subr.bf16.mxu1 %v5261_v54  ;;  %v5322_v53 = vld [vmem:[%s7383_s1 + $0x760] ss:$24 sps:$4 sm:$0xff]   ;;  %v5327_v54 = vld [vmem:[%s7383_s1 + $0x794] ss:$24 sps:$4 sm:$0xff]  }
  0xe9   : > { %2628 = vmatprep.subr.bf16.mxu0 %v5264_v55  ;;  %v5373_v55 = vld [vmem:[%s7385_s3 + $0xe0] ss:$16 sps:$4 sm:$0xff]  }
  0xeb   : > { %2547 = vmatpush1.bf16.msra.mxu1 %v5259_v56  ;;  %v5381_v56 = vld [vmem:[%s7385_s3 + $0x104] ss:$16 sps:$4 sm:$0xff]  }
  0xec   : > { %2629 = vmatpush1.bf16.msra.mxu0 %v5262_v57  ;;  %2548 = vmatprep.subr.bf16.mxu1 %v5267_v58  ;;  %v5325_v57 = vld [vmem:[%s7383_s1 + $0x790] ss:$24 sps:$4 sm:$0xff]   ;;  %v5330_v58 = vld [vmem:[%s7383_s1 + $0x7c4] ss:$24 sps:$4 sm:$0xff]  }
  0xed   : > { %2630 = vmatprep.subr.bf16.mxu0 %v5270_v59  ;;  %v5379_v59 = vld [vmem:[%s7385_s3 + $0x100] ss:$16 sps:$4 sm:$0xff]  }
  0xef   : > { %2549 = vmatpush1.bf16.msra.mxu1 %v5265_v60  ;;  %v5387_v60 = vld [vmem:[%s7385_s3 + $0x124] ss:$16 sps:$4 sm:$0xff]  }
  0xf0   : > { %2631 = vmatpush1.bf16.msra.mxu0 %v5268_v61  ;;  %2550 = vmatprep.subr.bf16.mxu1 %v5273_v62  ;;  %v5328_v61 = vld [vmem:[%s7383_s1 + $0x7c0] ss:$24 sps:$4 sm:$0xff]   ;;  %v5336_v62 = vld [vmem:[%s7383_s1 + $0x7f4] ss:$24 sps:$4 sm:$0xff]  }
  0xf1   : > { %2632 = vmatprep.subr.bf16.mxu0 %v5276_v63  ;;  %v5385_v63 = vld [vmem:[%s7385_s3 + $0x120] ss:$16 sps:$4 sm:$0xff]  }
  0xf3   : > { %2551 = vmatpush1.bf16.msra.mxu1 %v5271_v0  ;;  %v5393_v0 = vld [vmem:[%s7385_s3 + $0x144] ss:$16 sps:$4 sm:$0xff]  }
  0xf4   : > { %2633 = vmatpush1.bf16.msra.mxu0 %v5274_v1  ;;  %2552 = vmatprep.subr.bf16.mxu1 %v5279_v2  ;;  %v5334_v1 = vld [vmem:[%s7383_s1 + $0x7f0] ss:$24 sps:$4 sm:$0xff]   ;;  %v5342_v2 = vld [vmem:[%s7383_s1 + $0x824] ss:$24 sps:$4 sm:$0xff]  }
  0xf5   : > { %2634 = vmatprep.subr.bf16.mxu0 %v5282_v3  ;;  %v5391_v3 = vld [vmem:[%s7385_s3 + $0x140] ss:$16 sps:$4 sm:$0xff]  }
  0xf7   : > { %2553 = vmatpush1.bf16.msra.mxu1 %v5277_v4  ;;  %v5399_v4 = vld [vmem:[%s7385_s3 + $0x164] ss:$16 sps:$4 sm:$0xff]  }
  0xf8   : > { %2635 = vmatpush1.bf16.msra.mxu0 %v5280_v5  ;;  %2554 = vmatprep.subr.bf16.mxu1 %v5285_v8  ;;  %v5340_v5 = vld [vmem:[%s7383_s1 + $0x820] ss:$24 sps:$4 sm:$0xff]   ;;  %v5348_v8 = vld [vmem:[%s7383_s1 + $0x854] ss:$24 sps:$4 sm:$0xff]  }
  0xf9   : > { %2636 = vmatprep.subr.bf16.mxu0 %v5288_v9  ;;  %v5397_v9 = vld [vmem:[%s7385_s3 + $0x160] ss:$16 sps:$4 sm:$0xff]  }
  0xfb   : > { %2555 = vmatpush1.bf16.msra.mxu1 %v5283_v10  ;;  %v5405_v10 = vld [vmem:[%s7385_s3 + $0x184] ss:$16 sps:$4 sm:$0xff]  }
  0xfc   : > { %2637 = vmatpush1.bf16.msra.mxu0 %v5286_v11  ;;  %2556 = vmatprep.subr.bf16.mxu1 %v5291_v12  ;;  %v5346_v11 = vld [vmem:[%s7383_s1 + $0x850] ss:$24 sps:$4 sm:$0xff]  }
  0xfd   : > { %2638 = vmatprep.subr.bf16.mxu0 %v5294_v13  ;;  %v5403_v12 = vld [vmem:[%s7385_s3 + $0x180] ss:$16 sps:$4 sm:$0xff]   ;;  %v5354_v13 = vld [vmem:[%s7383_s1 + $0x884] ss:$24 sps:$4 sm:$0xff]  }
  0xff   : > { %2557 = vmatpush1.bf16.msra.mxu1 %v5289_v15  ;;  %v5411_v15 = vld [vmem:[%s7385_s3 + $0x1a4] ss:$16 sps:$4 sm:$0xff]  }
 0x100   : > { %2639 = vmatpush1.bf16.msra.mxu0 %v5292_v16  ;;  %2558 = vmatprep.subr.bf16.mxu1 %v5297_v17  ;;  %v5352_v16 = vld [vmem:[%s7383_s1 + $0x880] ss:$24 sps:$4 sm:$0xff]  }
 0x101   : > { %2640 = vmatprep.subr.bf16.mxu0 %v5300_v18  ;;  %v5409_v17 = vld [vmem:[%s7385_s3 + $0x1a0] ss:$16 sps:$4 sm:$0xff]   ;;  %v5360_v18 = vld [vmem:[%s7383_s1 + $0x8b4] ss:$24 sps:$4 sm:$0xff]  }
 0x103   : > { %2559 = vmatpush1.bf16.msra.mxu1 %v5295_v19  ;;  %v5417_v19 = vld [vmem:[%s7385_s3 + $0x1c4] ss:$16 sps:$4 sm:$0xff]  }
 0x104   : > { %2641 = vmatpush1.bf16.msra.mxu0 %v5298_v20  ;;  %3685 = vmatprep.subr.bf16.mxu1 %v5333_v22  ;;  %v5358_v20 = vld [vmem:[%s7383_s1 + $0x8b0] ss:$24 sps:$4 sm:$0xff]   ;;  %v5366_v22 = vld [vmem:[%s7383_s1 + $0x8e4] ss:$24 sps:$4 sm:$0xff]  }
 0x105   : > { %2651 = vmatprep.subr.bf16.mxu0 %v5303_v21  ;;  %v5415_v21 = vld [vmem:[%s7385_s3 + $0x1c0] ss:$16 sps:$4 sm:$0xff]  }
 0x106   : > { %2561 = vmatmul.mubr.bf16.vlgmr.msra.gmra.mrb[4].mxu1 %v6168_v14 }
 0x107   : > { %2643 = vmatmul.mubr.bf16.vlgmr.msra.gmra.mrb[4].mxu0 %v5961_v7  ;;  %3686 = vmatpush1.bf16.msra.mxu1 %v5331_v24  ;;  %v5345_v7 = vld [vmem:[%s7385_s3 + $0x44] ss:$16 sps:$4 sm:$0xff]   ;;  %v5364_v24 = vld [vmem:[%s7383_s1 + $0x8e0] ss:$24 sps:$4 sm:$0xff]  }
 0x108   : > { %2652 = vmatpush1.bf16.msra.mxu0 %v5301_v23  ;;  %3687 = vmatprep.subr.bf16.mxu1 %v5339_v47  ;;  %v5423_v23 = vld [vmem:[%s7385_s3 + $0x1e4] ss:$16 sps:$4 sm:$0xff]   ;;  %v5372_v47 = vld [vmem:[%s7385_s3 + $0xc] ss:$16 sps:$4 sm:$0xff]  }
 0x109   : > { %2653 = vmatprep.subr.bf16.mxu0 %v5306_v25  ;;  %2683 = vmatprep.mubr.bf16.mxu0 %v6046_v34  ;;  %v5351_v34 = vld [vmem:[%s7385_s3 + $0x64] ss:$16 sps:$4 sm:$0xff]   ;;  %v5421_v25 = vld [vmem:[%s7385_s3 + $0x1e0] ss:$16 sps:$4 sm:$0xff]  }
 0x10b   : > { %3688 = vmatpush1.bf16.msra.mxu1 %v5337_v26  ;;  %v5370_v26 = vld [vmem:[%s7385_s3 + $0x8] ss:$16 sps:$4 sm:$0xff]  }
 0x10c   : > { %2654 = vmatpush1.bf16.msra.mxu0 %v5304_v6  ;;  %3689 = vmatprep.subr.bf16.mxu1 %v5345_v7  ;;  %v5447_v6 = vld [vmem:[%s7385_s3 + $0x204] ss:$16 sps:$4 sm:$0xff]   ;;  %v5376_v7 = vld [vmem:[%s7385_s3 + $0x28] ss:$16 sps:$4 sm:$0xff]  }
 0x10d   : > { %2655 = vmatprep.subr.bf16.mxu0 %v5309_v27  ;;  %v5378_v27 = vld [vmem:[%s7385_s3 + $0x2c] ss:$16 sps:$4 sm:$0xff]  }
 0x10f   : > { %3690 = vmatpush1.bf16.msra.mxu1 %v5343_v29  ;;  %v5382_v29 = vld [vmem:[%s7385_s3 + $0x48] ss:$16 sps:$4 sm:$0xff]  }
 0x110   : > { %2656 = vmatpush1.bf16.msra.mxu0 %v5307_v28  ;;  %3691 = vmatprep.subr.bf16.mxu1 %v5351_v34  ;;  %v832_v28 = vlaneseq }
 0x111   : > { %2657 = vmatprep.subr.bf16.mxu0 %v5312_v51  ;;  %v5384_v51 = vld [vmem:[%s7385_s3 + $0x4c] ss:$16 sps:$4 sm:$0xff]  }
 0x112   : > { %v6777_v34 = vshrl.u32 %v832_v28, 7  ;;  %v5487_v28 = vld [vmem:[%s7385_s3 + $0x2e0] ss:$16 sps:$4 sm:$0xff]  }
 0x113   : > { %3692 = vmatpush1.bf16.msra.mxu1 %v5349_v32  ;;  %v5396_v32 = vld [vmem:[%s7385_s3 + $0x8c] ss:$16 sps:$4 sm:$0xff]  }
 0x114   : > { %2658 = vmatpush1.bf16.msra.mxu0 %v5310_v30  ;;  %3693 = vmatprep.subr.bf16.mxu1 %v5357_v33  ;;  %v5388_v30 = vld [vmem:[%s7385_s3 + $0x68] ss:$16 sps:$4 sm:$0xff]   ;;  %v6792_v33 = vld [vmem:[%s7384_s2] sm:$0x3f] }
 0x115   : > { %2659 = vmatprep.subr.bf16.mxu0 %v5315_v31  ;;  %v834_v31 = vsub.s32 0, %v6777_v34 }
 0x117   : > { %3694 = vmatpush1.bf16.msra.mxu1 %v5355_v37  ;;  %v835_v37 = vrot.slane %v6792_v33, %v834_v31 }
 0x118   : > { %2660 = vmatpush1.bf16.msra.mxu0 %v5313_v35  ;;  %3695 = vmatprep.subr.bf16.mxu1 %v5363_v38  ;;  %v838_v35 = vsub.s32 1, %v6777_v34  ;;  %v5402_v38 = vld [vmem:[%s7385_s3 + $0xac] ss:$16 sps:$4 sm:$0xff]  }
 0x119   : > { %2661 = vmatprep.subr.bf16.mxu0 %v5318_v36  ;;  %v6637_v43 = vpop.f32.mrb[0].mxu1  ;;  %v5394_v36 = vld [vmem:[%s7385_s3 + $0x88] ss:$16 sps:$4 sm:$0xff]  }
 0x11a   : > { %v6639_v44 = vpop.f32.mrb[1].mxu1 }
 0x11b   : > { %v2361_v45 = vpop.f32.mrb[2].mxu1  ;;  %3696 = vmatpush1.bf16.msra.mxu1 %v5361_v41  ;;  %v2358_v41 = vadd.f32 %v6637_v43, %v835_v37  ;;  %v5414_v43 = vld [vmem:[%s7385_s3 + $0xec] ss:$16 sps:$4 sm:$0xff]  }
 0x11c   : > { %2662 = vmatpush1.bf16.msra.mxu0 %v5316_v39  ;;  %v2362_v49 = vpop.f32.mrb[3].mxu1  ;;  %3697 = vmatprep.subr.bf16.mxu1 %v5369_v42  ;;  %v839_v39 = vrot.slane %v6792_v33, %v838_v35  ;;  %v5408_v42 = vld [vmem:[%s7385_s3 + $0xcc] ss:$16 sps:$4 sm:$0xff]  }
 0x11d   : > { %2663 = vmatprep.subr.bf16.mxu0 %v5321_v40  ;;  %v5400_v40 = vld [vmem:[%s7385_s3 + $0xa8] ss:$16 sps:$4 sm:$0xff]   ;;  %v5468_v37 = vld [vmem:[%s7385_s3 + $0x26c] ss:$16 sps:$4 sm:$0xff]  }
 0x11e   : > { %v2360_v45 = vadd.f32 %v6639_v44, %v839_v39  ;;  %v5412_v44 = vld [vmem:[%s7385_s3 + $0xe8] ss:$16 sps:$4 sm:$0xff]   ;;  %v5507_v39 = vld [vmem:[%s7385_s3 + $0x344] ss:$16 sps:$4 sm:$0xff]  }
 0x11f   : > { %3698 = vmatpush1.bf16.msra.mxu1 %v5367_v48 }
 0x120   : > { %2664 = vmatpush1.bf16.msra.mxu0 %v5319_v46  ;;  %3699 = vmatprep.subr.bf16.mxu1 %v5375_v52 }
 0x121   : > { %2665 = vmatprep.subr.bf16.mxu0 %v5324_v50 }
 0x123   : > { %3700 = vmatpush1.bf16.msra.mxu1 %v5373_v55  ;;  %v5420_v55 = vld [vmem:[%s7385_s3 + $0x10c] ss:$16 sps:$4 sm:$0xff]  }
 0x124   : > { %2666 = vmatpush1.bf16.msra.mxu0 %v5322_v53  ;;  %3701 = vmatprep.subr.bf16.mxu1 %v5381_v56  ;;  %v5406_v53 = vld [vmem:[%s7385_s3 + $0xc8] ss:$16 sps:$4 sm:$0xff]  }
 0x125   : > { %2667 = vmatprep.subr.bf16.mxu0 %v5327_v54  ;;  %v5418_v56 = vld [vmem:[%s7385_s3 + $0x108] ss:$16 sps:$4 sm:$0xff]  }
 0x127   : > { %3702 = vmatpush1.bf16.msra.mxu1 %v5379_v59 }
 0x128   : > { %2668 = vmatpush1.bf16.msra.mxu0 %v5325_v57  ;;  %3703 = vmatprep.subr.bf16.mxu1 %v5387_v60  ;;  %v5426_v57 = vld [vmem:[%s7385_s3 + $0x12c] ss:$16 sps:$4 sm:$0xff]   ;;  %v5424_v60 = vld [vmem:[%s7385_s3 + $0x128] ss:$16 sps:$4 sm:$0xff]  }
 0x129   : > { %2669 = vmatprep.subr.bf16.mxu0 %v5330_v58 }
 0x12b   : > { %3704 = vmatpush1.bf16.msra.mxu1 %v5385_v63  ;;  %v5445_v63 = vld [vmem:[%s7385_s3 + $0x200] ss:$16 sps:$4 sm:$0xff]  }
 0x12c   : > { %2670 = vmatpush1.bf16.msra.mxu0 %v5328_v61  ;;  %3705 = vmatprep.subr.bf16.mxu1 %v5393_v0 }
 0x12d   : > { %2671 = vmatprep.subr.bf16.mxu0 %v5336_v62  ;;  %v5429_v62 = vld [vmem:[%s7385_s3 + $0x14c] ss:$16 sps:$4 sm:$0xff]  }
 0x12f   : > { %3706 = vmatpush1.bf16.msra.mxu1 %v5391_v3  ;;  %v5432_v3 = vld [vmem:[%s7385_s3 + $0x16c] ss:$16 sps:$4 sm:$0xff]  }
 0x130   : > { %2672 = vmatpush1.bf16.msra.mxu0 %v5334_v1  ;;  %3707 = vmatprep.subr.bf16.mxu1 %v5399_v4  ;;  %v5453_v1 = vld [vmem:[%s7385_s3 + $0x224] ss:$16 sps:$4 sm:$0xff]   ;;  %v5451_v4 = vld [vmem:[%s7385_s3 + $0x220] ss:$16 sps:$4 sm:$0xff]  }
 0x131   : > { %2673 = vmatprep.subr.bf16.mxu0 %v5342_v2  ;;  %v5427_v2 = vld [vmem:[%s7385_s3 + $0x148] ss:$16 sps:$4 sm:$0xff]  }
 0x133   : > { %3708 = vmatpush1.bf16.msra.mxu1 %v5397_v9  ;;  %v5435_v9 = vld [vmem:[%s7385_s3 + $0x18c] ss:$16 sps:$4 sm:$0xff]  }
 0x134   : > { %2674 = vmatpush1.bf16.msra.mxu0 %v5340_v5  ;;  %3709 = vmatprep.subr.bf16.mxu1 %v5405_v10  ;;  %v5459_v5 = vld [vmem:[%s7385_s3 + $0x244] ss:$16 sps:$4 sm:$0xff]   ;;  %v5457_v10 = vld [vmem:[%s7385_s3 + $0x240] ss:$16 sps:$4 sm:$0xff]  }
 0x135   : > { %2675 = vmatprep.subr.bf16.mxu0 %v5348_v8  ;;  %v5430_v8 = vld [vmem:[%s7385_s3 + $0x168] ss:$16 sps:$4 sm:$0xff]  }
 0x137   : > { %3710 = vmatpush1.bf16.msra.mxu1 %v5403_v12  ;;  %v5433_v12 = vld [vmem:[%s7385_s3 + $0x188] ss:$16 sps:$4 sm:$0xff]  }
 0x138   : > { %2676 = vmatpush1.bf16.msra.mxu0 %v5346_v11  ;;  %3711 = vmatprep.subr.bf16.mxu1 %v5411_v15  ;;  %v5465_v11 = vld [vmem:[%s7385_s3 + $0x264] ss:$16 sps:$4 sm:$0xff]   ;;  %v5463_v15 = vld [vmem:[%s7385_s3 + $0x260] ss:$16 sps:$4 sm:$0xff]  }
 0x139   : > { %2677 = vmatprep.subr.bf16.mxu0 %v5354_v13  ;;  %v5438_v13 = vld [vmem:[%s7385_s3 + $0x1ac] ss:$16 sps:$4 sm:$0xff]  }
 0x13b   : > { %3712 = vmatpush1.bf16.msra.mxu1 %v5409_v17  ;;  %v5436_v17 = vld [vmem:[%s7385_s3 + $0x1a8] ss:$16 sps:$4 sm:$0xff]  }
 0x13c   : > { %2678 = vmatpush1.bf16.msra.mxu0 %v5352_v16  ;;  %3713 = vmatprep.subr.bf16.mxu1 %v5417_v19  ;;  %v5471_v16 = vld [vmem:[%s7385_s3 + $0x284] ss:$16 sps:$4 sm:$0xff]   ;;  %v5469_v19 = vld [vmem:[%s7385_s3 + $0x280] ss:$16 sps:$4 sm:$0xff]  }
 0x13d   : > { %2679 = vmatprep.subr.bf16.mxu0 %v5360_v18  ;;  %v5441_v18 = vld [vmem:[%s7385_s3 + $0x1cc] ss:$16 sps:$4 sm:$0xff]  }
 0x13f   : > { %3714 = vmatpush1.bf16.msra.mxu1 %v5415_v21  ;;  %v5439_v21 = vld [vmem:[%s7385_s3 + $0x1c8] ss:$16 sps:$4 sm:$0xff]  }
 0x140   : > { %2680 = vmatpush1.bf16.msra.mxu0 %v5358_v20  ;;  %3715 = vmatprep.subr.bf16.mxu1 %v5423_v23  ;;  %v5477_v20 = vld [vmem:[%s7385_s3 + $0x2a4] ss:$16 sps:$4 sm:$0xff]   ;;  %v5475_v23 = vld [vmem:[%s7385_s3 + $0x2a0] ss:$16 sps:$4 sm:$0xff]  }
 0x141   : > { %2681 = vmatprep.subr.bf16.mxu0 %v5366_v22  ;;  %v5444_v22 = vld [vmem:[%s7385_s3 + $0x1ec] ss:$16 sps:$4 sm:$0xff]  }
 0x143   : > { %3716 = vmatpush1.bf16.msra.mxu1 %v5421_v25  ;;  %v5442_v25 = vld [vmem:[%s7385_s3 + $0x1e8] ss:$16 sps:$4 sm:$0xff]  }
 0x144   : > { %2682 = vmatpush1.bf16.msra.mxu0 %v5364_v24  ;;  %3726 = vmatprep.subr.bf16.mxu1 %v5447_v6  ;;  %v5483_v24 = vld [vmem:[%s7385_s3 + $0x2c4] ss:$16 sps:$4 sm:$0xff]   ;;  %v5481_v6 = vld [vmem:[%s7385_s3 + $0x2c0] ss:$16 sps:$4 sm:$0xff]  }
 0x145   : > { %3808 = vmatprep.subr.bf16.mxu0 %v5372_v47  ;;  %v5450_v47 = vld [vmem:[%s7385_s3 + $0x20c] ss:$16 sps:$4 sm:$0xff]  }
 0x147   : > { %2684 = vmatmul.mubr.bf16.vlgmr.msra.gmra.mrb[4].mxu0 %v6168_v14  ;;  %v5390_v14 = vld [vmem:[%s7385_s3 + $0x6c] ss:$16 sps:$4 sm:$0xff]  }
 0x148   : > { %3809 = vmatpush1.bf16.msra.mxu0 %v5370_v26  ;;  %v5489_v26 = vld [vmem:[%s7385_s3 + $0x2e4] ss:$16 sps:$4 sm:$0xff]  }
 0x149   : > { %3810 = vmatprep.subr.bf16.mxu0 %v5378_v27  ;;  %v5448_v27 = vld [vmem:[%s7385_s3 + $0x208] ss:$16 sps:$4 sm:$0xff]  }
 0x14c   : > { %3811 = vmatpush1.bf16.msra.mxu0 %v5376_v7  ;;  %v5456_v7 = vld [vmem:[%s7385_s3 + $0x22c] ss:$16 sps:$4 sm:$0xff]  }
 0x14d   : > { %3812 = vmatprep.subr.bf16.mxu0 %v5384_v51  ;;  %v5495_v51 = vld [vmem:[%s7385_s3 + $0x304] ss:$16 sps:$4 sm:$0xff]  }
 0x150   : > { %3813 = vmatpush1.bf16.msra.mxu0 %v5382_v29  ;;  %v5454_v29 = vld [vmem:[%s7385_s3 + $0x228] ss:$16 sps:$4 sm:$0xff]  }
 0x151   : > { %3814 = vmatprep.subr.bf16.mxu0 %v5390_v14  ;;  %v5462_v14 = vld [vmem:[%s7385_s3 + $0x24c] ss:$16 sps:$4 sm:$0xff]  }
 0x154   : > { %3815 = vmatpush1.bf16.msra.mxu0 %v5388_v30  ;;  %v5493_v30 = vld [vmem:[%s7385_s3 + $0x300] ss:$16 sps:$4 sm:$0xff]  }
 0x155   : > { %3816 = vmatprep.subr.bf16.mxu0 %v5396_v32  ;;  %v5501_v32 = vld [vmem:[%s7385_s3 + $0x324] ss:$16 sps:$4 sm:$0xff]  }
 0x158   : > { %3817 = vmatpush1.bf16.msra.mxu0 %v5394_v36  ;;  %v5460_v36 = vld [vmem:[%s7385_s3 + $0x248] ss:$16 sps:$4 sm:$0xff]  }
 0x159   : > { %3818 = vmatprep.subr.bf16.mxu0 %v5402_v38  ;;  %v5499_v38 = vld [vmem:[%s7385_s3 + $0x320] ss:$16 sps:$4 sm:$0xff]  }
 0x15a   : > { %v2439_v46 = vpop.f32.mrb[0].mxu0 }
 0x15b   : > { %v4855_v48 = vadd.f32 %v2439_v46, %v2358_v41  ;;  %v2441_v49 = vpop.f32.mrb[1].mxu0  ;;  %v5474_v41 = vld [vmem:[%s7385_s3 + $0x28c] ss:$16 sps:$4 sm:$0xff]   ;;  %v5472_v46 = vld [vmem:[%s7385_s3 + $0x288] ss:$16 sps:$4 sm:$0xff]  }
 0x15c   : > { %v4857_v50 = vadd.f32 %v2441_v49, %v2360_v45  ;;  %v2443_v52 = vpop.f32.mrb[2].mxu0  ;;  %3819 = vmatpush1.bf16.msra.mxu0 %v5400_v40  ;;  %v5466_v40 = vld [vmem:[%s7385_s3 + $0x268] ss:$16 sps:$4 sm:$0xff]   ;;  %v5513_v45 = vld [vmem:[%s7385_s3 + $0x364] ss:$16 sps:$4 sm:$0xff]  }
 0x15d   : > { %5669 = vtanh.f32 %v4855_v48  ;;  %v2444_v54 = vpop.f32.mrb[3].mxu0  ;;  %3820 = vmatprep.subr.bf16.mxu0 %v5408_v42  ;;  %v5505_v42 = vld [vmem:[%s7385_s3 + $0x340] ss:$16 sps:$4 sm:$0xff]   ;;  %v5480_v48 = vld [vmem:[%s7385_s3 + $0x2ac] ss:$16 sps:$4 sm:$0xff]  }
 0x15e   : > { %5671 = vtanh.f32 %v4857_v50  ;;  %v5511_v49 = vld [vmem:[%s7385_s3 + $0x360] ss:$16 sps:$4 sm:$0xff]   ;;  %v5519_v50 = vld [vmem:[%s7385_s3 + $0x384] ss:$16 sps:$4 sm:$0xff]   ;;  %v5478_v52 = vld [vmem:[%s7385_s3 + $0x2a8] ss:$16 sps:$4 sm:$0xff]  }
 0x15f   : > { %v5517_v54 = vld [vmem:[%s7385_s3 + $0x380] ss:$16 sps:$4 sm:$0xff]  }
 0x160   : > { %3821 = vmatpush1.bf16.msra.mxu0 %v5406_v53  ;;  %v5486_v53 = vld [vmem:[%s7385_s3 + $0x2cc] ss:$16 sps:$4 sm:$0xff]  }
 0x161   : > { %3822 = vmatprep.subr.bf16.mxu0 %v5414_v43  ;;  %v5525_v43 = vld [vmem:[%s7385_s3 + $0x3a4] ss:$16 sps:$4 sm:$0xff]  }
 0x164   : > { %3823 = vmatpush1.bf16.msra.mxu0 %v5412_v44  ;;  %v5484_v44 = vld [vmem:[%s7385_s3 + $0x2c8] ss:$16 sps:$4 sm:$0xff]  }
 0x165   : > { %3824 = vmatprep.subr.bf16.mxu0 %v5420_v55  ;;  %v5492_v55 = vld [vmem:[%s7385_s3 + $0x2ec] ss:$16 sps:$4 sm:$0xff]  }
 0x167   : > { %v5670_v58 = vpop.eup %5669 }
 0x168   : > { %v5672_v59 = vpop.eup %5671  ;;  %3825 = vmatpush1.bf16.msra.mxu0 %v5418_v56  ;;  %v2698_v0 = vpack.c.bf16 %v5670_v58, %v5670_v58  ;;  %v5523_v56 = vld [vmem:[%s7385_s3 + $0x3a0] ss:$16 sps:$4 sm:$0xff]   ;;  %v5490_v58 = vld [vmem:[%s7385_s3 + $0x2e8] ss:$16 sps:$4 sm:$0xff]  }
 0x169   : > { %v2699_v61 = vpack.c.bf16 %v5672_v59, %v5672_v59  ;;  %3826 = vmatprep.subr.bf16.mxu0 %v5426_v57  ;;  %v5531_v57 = vld [vmem:[%s7385_s3 + $0x3c4] ss:$16 sps:$4 sm:$0xff]   ;;  %v5498_v59 = vld [vmem:[%s7385_s3 + $0x30c] ss:$16 sps:$4 sm:$0xff]  }
 0x16b   : > { %3717 = vmatprep.mubr.bf16.mxu1 %v2699_v61  ;;  %3840 = vmatprep.mubr.bf16.mxu0 %v2699_v61  ;;  %v5537_v61 = vld [vmem:[%s7385_s3 + $0x3e4] ss:$16 sps:$4 sm:$0xff]  }
 0x16c   : > { %3718 = vmatmul.mubr.bf16.vlgmr.msra.gmra.mrb[8].mxu1 %v2698_v0  ;;  %3827 = vmatpush1.bf16.msra.mxu0 %v5424_v60  ;;  %v5529_v60 = vld [vmem:[%s7385_s3 + $0x3c0] ss:$16 sps:$4 sm:$0xff]  }
 0x16d   : > { %3828 = vmatprep.subr.bf16.mxu0 %v5429_v62  ;;  %3727 = vmatpush1.bf16.msra.mxu1 %v5445_v63  ;;  %v5496_v62 = vld [vmem:[%s7385_s3 + $0x308] ss:$16 sps:$4 sm:$0xff]   ;;  %v5504_v63 = vld [vmem:[%s7385_s3 + $0x32c] ss:$16 sps:$4 sm:$0xff]  }
 0x16e   : > { %3728 = vmatprep.subr.bf16.mxu1 %v5453_v1  ;;  %v5543_v1 = vld [vmem:[%s7385_s3 + $0x404] ss:$16 sps:$4 sm:$0xff]  }
 0x170   : > { %3829 = vmatpush1.bf16.msra.mxu0 %v5427_v2  ;;  %v5502_v2 = vld [vmem:[%s7385_s3 + $0x328] ss:$16 sps:$4 sm:$0xff]  }
 0x171   : > { %3830 = vmatprep.subr.bf16.mxu0 %v5432_v3  ;;  %3729 = vmatpush1.bf16.msra.mxu1 %v5451_v4  ;;  %v5510_v3 = vld [vmem:[%s7385_s3 + $0x34c] ss:$16 sps:$4 sm:$0xff]   ;;  %v5508_v4 = vld [vmem:[%s7385_s3 + $0x348] ss:$16 sps:$4 sm:$0xff]  }
 0x172   : > { %3730 = vmatprep.subr.bf16.mxu1 %v5459_v5  ;;  %v5516_v5 = vld [vmem:[%s7385_s3 + $0x36c] ss:$16 sps:$4 sm:$0xff]  }
 0x174   : > { %3831 = vmatpush1.bf16.msra.mxu0 %v5430_v8  ;;  %v5514_v8 = vld [vmem:[%s7385_s3 + $0x368] ss:$16 sps:$4 sm:$0xff]  }
 0x175   : > { %3832 = vmatprep.subr.bf16.mxu0 %v5435_v9  ;;  %3731 = vmatpush1.bf16.msra.mxu1 %v5457_v10  ;;  %v5522_v9 = vld [vmem:[%s7385_s3 + $0x38c] ss:$16 sps:$4 sm:$0xff]   ;;  %v5520_v10 = vld [vmem:[%s7385_s3 + $0x388] ss:$16 sps:$4 sm:$0xff]  }
 0x176   : > { %3732 = vmatprep.subr.bf16.mxu1 %v5465_v11  ;;  %v5528_v11 = vld [vmem:[%s7385_s3 + $0x3ac] ss:$16 sps:$4 sm:$0xff]  }
 0x178   : > { %3833 = vmatpush1.bf16.msra.mxu0 %v5433_v12  ;;  %v5526_v12 = vld [vmem:[%s7385_s3 + $0x3a8] ss:$16 sps:$4 sm:$0xff]  }
 0x179   : > { %3834 = vmatprep.subr.bf16.mxu0 %v5438_v13  ;;  %3733 = vmatpush1.bf16.msra.mxu1 %v5463_v15  ;;  %v5534_v13 = vld [vmem:[%s7385_s3 + $0x3cc] ss:$16 sps:$4 sm:$0xff]   ;;  %v5532_v15 = vld [vmem:[%s7385_s3 + $0x3c8] ss:$16 sps:$4 sm:$0xff]  }
 0x17a   : > { %3734 = vmatprep.subr.bf16.mxu1 %v5471_v16  ;;  %v5540_v16 = vld [vmem:[%s7385_s3 + $0x3ec] ss:$16 sps:$4 sm:$0xff]  }
 0x17c   : > { %3835 = vmatpush1.bf16.msra.mxu0 %v5436_v17  ;;  %v5538_v17 = vld [vmem:[%s7385_s3 + $0x3e8] ss:$16 sps:$4 sm:$0xff]  }
 0x17d   : > { %3836 = vmatprep.subr.bf16.mxu0 %v5441_v18  ;;  %3735 = vmatpush1.bf16.msra.mxu1 %v5469_v19  ;;  %v5546_v18 = vld [vmem:[%s7385_s3 + $0x40c] ss:$16 sps:$4 sm:$0xff]   ;;  %v842_v19 = vsub.s32 2, %v6777_v34 }
 0x17e   : > { %3736 = vmatprep.subr.bf16.mxu1 %v5477_v20  ;;  %v846_v20 = vsub.s32 3, %v6777_v34 }
 0x180   : > { %3837 = vmatpush1.bf16.msra.mxu0 %v5439_v21  ;;  %v843_v21 = vrot.slane %v6792_v33, %v842_v19 }
 0x181   : > { %3838 = vmatprep.subr.bf16.mxu0 %v5444_v22  ;;  %3737 = vmatpush1.bf16.msra.mxu1 %v5475_v23  ;;  %v847_v22 = vrot.slane %v6792_v33, %v846_v20 }
 0x182   : > { %3738 = vmatprep.subr.bf16.mxu1 %v5483_v24 }
 0x184   : > { %3839 = vmatpush1.bf16.msra.mxu0 %v5442_v25 }
 0x185   : > { %3849 = vmatprep.subr.bf16.mxu0 %v5450_v47  ;;  %3739 = vmatpush1.bf16.msra.mxu1 %v5481_v6 }
 0x186   : > { %3740 = vmatprep.subr.bf16.mxu1 %v5489_v26 }
 0x187   : > { %3841 = vmatmul.mubr.bf16.vlgmr.msra.gmra.mrb[8].mxu0 %v2698_v0  ;;  %v5535_v0 = vld [vmem:[%s7385_s3 + $0x3e0] ss:$16 sps:$4 sm:$0xff]  }
 0x188   : > { %3850 = vmatpush1.bf16.msra.mxu0 %v5448_v27 }
 0x189   : > { %3851 = vmatprep.subr.bf16.mxu0 %v5456_v7  ;;  %3741 = vmatpush1.bf16.msra.mxu1 %v5487_v28 }
 0x18a   : > { %3742 = vmatprep.subr.bf16.mxu1 %v5495_v51  ;;  %v5541_v51 = vld [vmem:[%s7385_s3 + $0x400] ss:$16 sps:$4 sm:$0xff]  }
 0x18c   : > { %3852 = vmatpush1.bf16.msra.mxu0 %v5454_v29  ;;  %v5544_v29 = vld [vmem:[%s7385_s3 + $0x408] ss:$16 sps:$4 sm:$0xff]  }
 0x18d   : > { %3853 = vmatprep.subr.bf16.mxu0 %v5462_v14  ;;  %3743 = vmatpush1.bf16.msra.mxu1 %v5493_v30  ;;  %v5549_v30 = vld [vmem:[%s7385_s3 + $0x424] ss:$16 sps:$4 sm:$0xff]  }
 0x18e   : > { %3744 = vmatprep.subr.bf16.mxu1 %v5501_v32  ;;  %v5552_v32 = vld [vmem:[%s7385_s3 + $0x42c] ss:$16 sps:$4 sm:$0xff]  }
 0x190   : > { %3854 = vmatpush1.bf16.msra.mxu0 %v5460_v36  ;;  %v5547_v36 = vld [vmem:[%s7385_s3 + $0x420] ss:$16 sps:$4 sm:$0xff]  }
 0x191   : > { %3855 = vmatprep.subr.bf16.mxu0 %v5468_v37  ;;  %3745 = vmatpush1.bf16.msra.mxu1 %v5499_v38  ;;  %v5550_v37 = vld [vmem:[%s7385_s3 + $0x428] ss:$16 sps:$4 sm:$0xff]   ;;  %v5555_v38 = vld [vmem:[%s7385_s3 + $0x444] ss:$16 sps:$4 sm:$0xff]  }
 0x192   : > { %3746 = vmatprep.subr.bf16.mxu1 %v5507_v39  ;;  %v5558_v39 = vld [vmem:[%s7385_s3 + $0x44c] ss:$16 sps:$4 sm:$0xff]  }
 0x194   : > { %3856 = vmatpush1.bf16.msra.mxu0 %v5466_v40  ;;  %v5553_v40 = vld [vmem:[%s7385_s3 + $0x440] ss:$16 sps:$4 sm:$0xff]  }
 0x195   : > { %3857 = vmatprep.subr.bf16.mxu0 %v5474_v41  ;;  %3747 = vmatpush1.bf16.msra.mxu1 %v5505_v42  ;;  %v5556_v41 = vld [vmem:[%s7385_s3 + $0x448] ss:$16 sps:$4 sm:$0xff]   ;;  %v5561_v42 = vld [vmem:[%s7385_s3 + $0x464] ss:$16 sps:$4 sm:$0xff]  }
 0x196   : > { %3748 = vmatprep.subr.bf16.mxu1 %v5513_v45  ;;  %v5564_v45 = vld [vmem:[%s7385_s3 + $0x46c] ss:$16 sps:$4 sm:$0xff]  }
 0x198   : > { %3858 = vmatpush1.bf16.msra.mxu0 %v5472_v46  ;;  %v5559_v46 = vld [vmem:[%s7385_s3 + $0x460] ss:$16 sps:$4 sm:$0xff]  }
 0x199   : > { %3859 = vmatprep.subr.bf16.mxu0 %v5480_v48  ;;  %3749 = vmatpush1.bf16.msra.mxu1 %v5511_v49  ;;  %v5562_v48 = vld [vmem:[%s7385_s3 + $0x468] ss:$16 sps:$4 sm:$0xff]   ;;  %v5567_v49 = vld [vmem:[%s7385_s3 + $0x484] ss:$16 sps:$4 sm:$0xff]  }
 0x19a   : > { %3750 = vmatprep.subr.bf16.mxu1 %v5519_v50  ;;  %v5570_v50 = vld [vmem:[%s7385_s3 + $0x48c] ss:$16 sps:$4 sm:$0xff]  }
 0x19c   : > { %3860 = vmatpush1.bf16.msra.mxu0 %v5478_v52  ;;  %v5565_v52 = vld [vmem:[%s7385_s3 + $0x480] ss:$16 sps:$4 sm:$0xff]  }
 0x19d   : > { %3861 = vmatprep.subr.bf16.mxu0 %v5486_v53  ;;  %3751 = vmatpush1.bf16.msra.mxu1 %v5517_v54  ;;  %v5568_v53 = vld [vmem:[%s7385_s3 + $0x488] ss:$16 sps:$4 sm:$0xff]   ;;  %v5573_v54 = vld [vmem:[%s7385_s3 + $0x4a4] ss:$16 sps:$4 sm:$0xff]  }
 0x19e   : > { %3752 = vmatprep.subr.bf16.mxu1 %v5525_v43  ;;  %v5576_v43 = vld [vmem:[%s7385_s3 + $0x4ac] ss:$16 sps:$4 sm:$0xff]  }
 0x1a0   : > { %3862 = vmatpush1.bf16.msra.mxu0 %v5484_v44  ;;  %v5571_v44 = vld [vmem:[%s7385_s3 + $0x4a0] ss:$16 sps:$4 sm:$0xff]  }
 0x1a1   : > { %3863 = vmatprep.subr.bf16.mxu0 %v5492_v55  ;;  %3753 = vmatpush1.bf16.msra.mxu1 %v5523_v56  ;;  %v5574_v55 = vld [vmem:[%s7385_s3 + $0x4a8] ss:$16 sps:$4 sm:$0xff]   ;;  %v5579_v56 = vld [vmem:[%s7385_s3 + $0x4c4] ss:$16 sps:$4 sm:$0xff]  }
 0x1a2   : > { %3754 = vmatprep.subr.bf16.mxu1 %v5531_v57  ;;  %v5582_v57 = vld [vmem:[%s7385_s3 + $0x4cc] ss:$16 sps:$4 sm:$0xff]  }
 0x1a4   : > { %3864 = vmatpush1.bf16.msra.mxu0 %v5490_v58  ;;  %v5577_v58 = vld [vmem:[%s7385_s3 + $0x4c0] ss:$16 sps:$4 sm:$0xff]  }
 0x1a5   : > { %3865 = vmatprep.subr.bf16.mxu0 %v5498_v59  ;;  %3755 = vmatpush1.bf16.msra.mxu1 %v5529_v60  ;;  %v5580_v59 = vld [vmem:[%s7385_s3 + $0x4c8] ss:$16 sps:$4 sm:$0xff]   ;;  %v5585_v60 = vld [vmem:[%s7385_s3 + $0x4e4] ss:$16 sps:$4 sm:$0xff]  }
 0x1a6   : > { %3756 = vmatprep.subr.bf16.mxu1 %v5537_v61  ;;  %v5588_v61 = vld [vmem:[%s7385_s3 + $0x4ec] ss:$16 sps:$4 sm:$0xff]  }
 0x1a8   : > { %3866 = vmatpush1.bf16.msra.mxu0 %v5496_v62  ;;  %v5583_v62 = vld [vmem:[%s7385_s3 + $0x4e0] ss:$16 sps:$4 sm:$0xff]  }
 0x1a9   : > { %3867 = vmatprep.subr.bf16.mxu0 %v5504_v63  ;;  %3757 = vmatpush1.bf16.msra.mxu1 %v5535_v0  ;;  %v5586_v63 = vld [vmem:[%s7385_s3 + $0x4e8] ss:$16 sps:$4 sm:$0xff]   ;;  %v5591_v0 = vld [vmem:[%s7385_s3 + $0x504] ss:$16 sps:$4 sm:$0xff]  }
 0x1aa   : > { %3767 = vmatprep.subr.bf16.mxu1 %v5543_v1  ;;  %v5594_v1 = vld [vmem:[%s7385_s3 + $0x50c] ss:$16 sps:$4 sm:$0xff]  }
 0x1ac   : > { %3868 = vmatpush1.bf16.msra.mxu0 %v5502_v2  ;;  %v5589_v2 = vld [vmem:[%s7385_s3 + $0x500] ss:$16 sps:$4 sm:$0xff]  }
 0x1ad   : > { %3869 = vmatprep.subr.bf16.mxu0 %v5510_v3  ;;  %v5592_v3 = vld [vmem:[%s7385_s3 + $0x508] ss:$16 sps:$4 sm:$0xff]  }
 0x1b0   : > { %3870 = vmatpush1.bf16.msra.mxu0 %v5508_v4  ;;  %v5597_v4 = vld [vmem:[%s7385_s3 + $0x524] ss:$16 sps:$4 sm:$0xff]  }
 0x1b1   : > { %3871 = vmatprep.subr.bf16.mxu0 %v5516_v5  ;;  %v5600_v5 = vld [vmem:[%s7385_s3 + $0x52c] ss:$16 sps:$4 sm:$0xff]  }
 0x1b4   : > { %3872 = vmatpush1.bf16.msra.mxu0 %v5514_v8  ;;  %v5595_v8 = vld [vmem:[%s7385_s3 + $0x520] ss:$16 sps:$4 sm:$0xff]  }
 0x1b5   : > { %3873 = vmatprep.subr.bf16.mxu0 %v5522_v9  ;;  %v5598_v9 = vld [vmem:[%s7385_s3 + $0x528] ss:$16 sps:$4 sm:$0xff]  }
 0x1b8   : > { %3874 = vmatpush1.bf16.msra.mxu0 %v5520_v10  ;;  %v5603_v10 = vld [vmem:[%s7385_s3 + $0x544] ss:$16 sps:$4 sm:$0xff]  }
 0x1b9   : > { %3875 = vmatprep.subr.bf16.mxu0 %v5528_v11  ;;  %v5606_v11 = vld [vmem:[%s7385_s3 + $0x54c] ss:$16 sps:$4 sm:$0xff]  }
 0x1bc   : > { %3876 = vmatpush1.bf16.msra.mxu0 %v5526_v12  ;;  %v5601_v12 = vld [vmem:[%s7385_s3 + $0x540] ss:$16 sps:$4 sm:$0xff]  }
 0x1bd   : > { %3877 = vmatprep.subr.bf16.mxu0 %v5534_v13  ;;  %v5604_v13 = vld [vmem:[%s7385_s3 + $0x548] ss:$16 sps:$4 sm:$0xff]  }
 0x1c0   : > { %3878 = vmatpush1.bf16.msra.mxu0 %v5532_v15  ;;  %v5609_v15 = vld [vmem:[%s7385_s3 + $0x564] ss:$16 sps:$4 sm:$0xff]  }
 0x1c1   : > { %3879 = vmatprep.subr.bf16.mxu0 %v5540_v16  ;;  %v5612_v16 = vld [vmem:[%s7385_s3 + $0x56c] ss:$16 sps:$4 sm:$0xff]  }
 0x1c4   : > { %3880 = vmatpush1.bf16.msra.mxu0 %v5538_v17  ;;  %v850_v17 = vsub.s32 4, %v6777_v34 }
 0x1c5   : > { %3890 = vmatprep.subr.bf16.mxu0 %v5546_v18  ;;  %v854_v18 = vsub.s32 5, %v6777_v34  ;;  %v5668_v34 = vld [vmem:[%s7387_s5 + $0xb8] sm:$0xff]  }
 0x1d9   : > { %v2562_v23 = vpop.f32.mrb[4].mxu1 }
 0x1da   : > { %v4858_v24 = vadd.f32 %v2562_v23, %v843_v21  ;;  %v2564_v25 = vpop.f32.mrb[5].mxu1  ;;  %v5607_v21 = vld [vmem:[%s7385_s3 + $0x560] ss:$16 sps:$4 sm:$0xff]   ;;  %v5615_v23 = vld [vmem:[%s7385_s3 + $0x584] ss:$16 sps:$4 sm:$0xff]  }
 0x1db   : > { %v4859_v47 = vadd.f32 %v2564_v25, %v847_v22  ;;  %v2566_v6 = vpop.f32.mrb[6].mxu1  ;;  %v5610_v22 = vld [vmem:[%s7385_s3 + $0x568] ss:$16 sps:$4 sm:$0xff]   ;;  %v851_v25 = vrot.slane %v6792_v33, %v850_v17 }
 0x1dc   : > { %5673 = vtanh.f32 %v4858_v24  ;;  %v2567_v26 = vpop.f32.mrb[7].mxu1  ;;  %v5618_v24 = vld [vmem:[%s7385_s3 + $0x58c] ss:$16 sps:$4 sm:$0xff]   ;;  %v5613_v6 = vld [vmem:[%s7385_s3 + $0x580] ss:$16 sps:$4 sm:$0xff]  }
 0x1dd   : > { %5675 = vtanh.f32 %v4859_v47  ;;  %v855_v47 = vrot.slane %v6792_v33, %v854_v18  ;;  %v5616_v26 = vld [vmem:[%s7385_s3 + $0x588] ss:$16 sps:$4 sm:$0xff]   ;;  %v5624_v33 = vld [vmem:[%s7385_s3 + $0x5ac] ss:$16 sps:$4 sm:$0xff]  }
 0x1e6   : > { %v5674_v27 = vpop.eup %5673 }
 0x1e7   : > { %v5676_v7 = vpop.eup %5675  ;;  %v2700_v14 = vpack.c.bf16 %v5674_v27, %v5674_v27 }
 0x1e8   : > { %v2701_v28 = vpack.c.bf16 %v5676_v7, %v5676_v7  ;;  %v5621_v7 = vld [vmem:[%s7385_s3 + $0x5a4] ss:$16 sps:$4 sm:$0xff]  }
 0x1ea   : > { %3758 = vmatprep.mubr.bf16.mxu1 %v2701_v28  ;;  %3881 = vmatprep.mubr.bf16.mxu0 %v2701_v28 }
 0x1eb   : > { %3759 = vmatmul.mubr.bf16.vlgmr.msra.gmra.mrb[8].mxu1 %v2700_v14  ;;  %3882 = vmatmul.mubr.bf16.vlgmr.msra.gmra.mrb[8].mxu0 %v2700_v14 }
 0x1ec   : > { %3768 = vmatpush1.bf16.msra.mxu1 %v5541_v51  ;;  %3891 = vmatpush1.bf16.msra.mxu0 %v5544_v29 }
 0x1ed   : > { %3769 = vmatprep.subr.bf16.mxu1 %v5549_v30  ;;  %3892 = vmatprep.subr.bf16.mxu0 %v5552_v32  ;;  %v5619_v32 = vld [vmem:[%s7385_s3 + $0x5a0] ss:$16 sps:$4 sm:$0xff]  }
 0x1f0   : > { %3770 = vmatpush1.bf16.msra.mxu1 %v5547_v36  ;;  %3893 = vmatpush1.bf16.msra.mxu0 %v5550_v37  ;;  %v5622_v36 = vld [vmem:[%s7385_s3 + $0x5a8] ss:$16 sps:$4 sm:$0xff]   ;;  %v5627_v37 = vld [vmem:[%s7385_s3 + $0x5c4] ss:$16 sps:$4 sm:$0xff]  }
 0x1f1   : > { %3771 = vmatprep.subr.bf16.mxu1 %v5555_v38  ;;  %3894 = vmatprep.subr.bf16.mxu0 %v5558_v39  ;;  %v5630_v38 = vld [vmem:[%s7385_s3 + $0x5cc] ss:$16 sps:$4 sm:$0xff]   ;;  %v5625_v39 = vld [vmem:[%s7385_s3 + $0x5c0] ss:$16 sps:$4 sm:$0xff]  }
 0x1f4   : > { %3772 = vmatpush1.bf16.msra.mxu1 %v5553_v40  ;;  %3895 = vmatpush1.bf16.msra.mxu0 %v5556_v41  ;;  %v5628_v40 = vld [vmem:[%s7385_s3 + $0x5c8] ss:$16 sps:$4 sm:$0xff]   ;;  %v5633_v41 = vld [vmem:[%s7385_s3 + $0x5e4] ss:$16 sps:$4 sm:$0xff]  }
 0x1f5   : > { %3773 = vmatprep.subr.bf16.mxu1 %v5561_v42  ;;  %3896 = vmatprep.subr.bf16.mxu0 %v5564_v45  ;;  %v5636_v42 = vld [vmem:[%s7385_s3 + $0x5ec] ss:$16 sps:$4 sm:$0xff]   ;;  %v5631_v45 = vld [vmem:[%s7385_s3 + $0x5e0] ss:$16 sps:$4 sm:$0xff]  }
 0x1f8   : > { %3774 = vmatpush1.bf16.msra.mxu1 %v5559_v46  ;;  %3897 = vmatpush1.bf16.msra.mxu0 %v5562_v48  ;;  %v5634_v46 = vld [vmem:[%s7385_s3 + $0x5e8] ss:$16 sps:$4 sm:$0xff]   ;;  %v5637_v48 = vld [vmem:[%s7387_s5 + $0x40] sm:$0xff]  }
 0x1f9   : > { %3775 = vmatprep.subr.bf16.mxu1 %v5567_v49  ;;  %3898 = vmatprep.subr.bf16.mxu0 %v5570_v50 }
 0x1fc   : > { %3776 = vmatpush1.bf16.msra.mxu1 %v5565_v52  ;;  %3899 = vmatpush1.bf16.msra.mxu0 %v5568_v53  ;;  %v5638_v53 = vld [vmem:[%s7387_s5] sm:$0xff]  }
 0x1fd   : > { %3777 = vmatprep.subr.bf16.mxu1 %v5573_v54  ;;  %3900 = vmatprep.subr.bf16.mxu0 %v5576_v43  ;;  %v5639_v43 = vld [vmem:[%s7387_s5 + $0x48] sm:$0xff]  }
 0x200   : > { %3778 = vmatpush1.bf16.msra.mxu1 %v5571_v44  ;;  %3901 = vmatpush1.bf16.msra.mxu0 %v5574_v55  ;;  %v5640_v44 = vld [vmem:[%s7387_s5 + $0x8] sm:$0xff]   ;;  %v5641_v55 = vld [vmem:[%s7387_s5 + $0x50] sm:$0xff]  }
 0x201   : > { %3779 = vmatprep.subr.bf16.mxu1 %v5579_v56  ;;  %3902 = vmatprep.subr.bf16.mxu0 %v5582_v57  ;;  %v5642_v56 = vld [vmem:[%s7387_s5 + $0x10] sm:$0xff]   ;;  %v5643_v57 = vld [vmem:[%s7387_s5 + $0x58] sm:$0xff]  }
 0x204   : > { %3780 = vmatpush1.bf16.msra.mxu1 %v5577_v58  ;;  %3903 = vmatpush1.bf16.msra.mxu0 %v5580_v59  ;;  %v5644_v58 = vld [vmem:[%s7387_s5 + $0x18] sm:$0xff]   ;;  %v5645_v59 = vld [vmem:[%s7387_s5 + $0x60] sm:$0xff]  }
 0x205   : > { %3781 = vmatprep.subr.bf16.mxu1 %v5585_v60  ;;  %3904 = vmatprep.subr.bf16.mxu0 %v5588_v61  ;;  %v5646_v60 = vld [vmem:[%s7387_s5 + $0x20] sm:$0xff]   ;;  %v5647_v61 = vld [vmem:[%s7387_s5 + $0x68] sm:$0xff]  }
 0x208   : > { %3782 = vmatpush1.bf16.msra.mxu1 %v5583_v62  ;;  %3905 = vmatpush1.bf16.msra.mxu0 %v5586_v63  ;;  %v5648_v62 = vld [vmem:[%s7387_s5 + $0x28] sm:$0xff]   ;;  %v5649_v63 = vld [vmem:[%s7387_s5 + $0x70] sm:$0xff]  }
 0x209   : > { %3783 = vmatprep.subr.bf16.mxu1 %v5591_v0  ;;  %3906 = vmatprep.subr.bf16.mxu0 %v5594_v1  ;;  %v5650_v0 = vld [vmem:[%s7387_s5 + $0x30] sm:$0xff]   ;;  %v5651_v1 = vld [vmem:[%s7387_s5 + $0x78] sm:$0xff]  }
 0x20c   : > { %3784 = vmatpush1.bf16.msra.mxu1 %v5589_v2  ;;  %3907 = vmatpush1.bf16.msra.mxu0 %v5592_v3  ;;  %v5652_v2 = vld [vmem:[%s7387_s5 + $0x38] sm:$0xff]   ;;  %v5653_v3 = vld [vmem:[%s7387_s5 + $0xc0] sm:$0xff]  }
 0x20d   : > { %3785 = vmatprep.subr.bf16.mxu1 %v5597_v4  ;;  %3908 = vmatprep.subr.bf16.mxu0 %v5600_v5  ;;  %v759_v4 = vld [vmem:[%s7386_s4] sm:$0xf] }
 0x20e   : > { %v2708_v5 = vrot.slane %v759_v4, %v834_v31 }
 0x210   : > { %3786 = vmatpush1.bf16.msra.mxu1 %v5595_v8  ;;  %3909 = vmatpush1.bf16.msra.mxu0 %v5598_v9  ;;  %v2712_v8 = vrot.slane %v759_v4, %v838_v35  ;;  %v2720_v9 = vrot.slane %v759_v4, %v846_v20  ;;  %v5654_v35 = vld [vmem:[%s7387_s5 + $0x80] sm:$0xff]  }
 0x211   : > { %3787 = vmatprep.subr.bf16.mxu1 %v5603_v10  ;;  %3910 = vmatprep.subr.bf16.mxu0 %v5606_v11 }
 0x214   : > { %3788 = vmatpush1.bf16.msra.mxu1 %v5601_v12  ;;  %3911 = vmatpush1.bf16.msra.mxu0 %v5604_v13 }
 0x215   : > { %3789 = vmatprep.subr.bf16.mxu1 %v5609_v15  ;;  %3912 = vmatprep.subr.bf16.mxu0 %v5612_v16 }
 0x218   : > { %3790 = vmatpush1.bf16.msra.mxu1 %v5607_v21  ;;  %3913 = vmatpush1.bf16.msra.mxu0 %v5610_v22 }
 0x219   : > { %3791 = vmatprep.subr.bf16.mxu1 %v5615_v23  ;;  %3914 = vmatprep.subr.bf16.mxu0 %v5618_v24 }
 0x21a   : > { %v2685_v27 = vpop.f32.mrb[4].mxu0 }
 0x21b   : > { %v4860_v28 = vadd.f32 %v2685_v27, %v851_v25  ;;  %v2687_v51 = vpop.f32.mrb[5].mxu0  ;;  %v5656_v27 = vld [vmem:[%s7387_s5 + $0x88] sm:$0xff]  }
 0x21c   : > { %v4861_v29 = vadd.f32 %v2687_v51, %v855_v47  ;;  %v2689_v14 = vpop.f32.mrb[6].mxu0  ;;  %3792 = vmatpush1.bf16.msra.mxu1 %v5613_v6  ;;  %3915 = vmatpush1.bf16.msra.mxu0 %v5616_v26  ;;  %v5655_v6 = vld [vmem:[%s7387_s5 + $0xc8] sm:$0xff]   ;;  %v5660_v51 = vld [vmem:[%s7387_s5 + $0x98] sm:$0xff]  }
 0x21d   : > { %5677 = vtanh.f32 %v4860_v28  ;;  %v2690_v30 = vpop.f32.mrb[7].mxu0  ;;  %3793 = vmatprep.subr.bf16.mxu1 %v5621_v7  ;;  %3916 = vmatprep.subr.bf16.mxu0 %v5624_v33  ;;  %v5657_v7 = vld [vmem:[%s7387_s5 + $0xd0] sm:$0xff]   ;;  %v5659_v28 = vld [vmem:[%s7387_s5 + $0xd8] sm:$0xff]   ;;  %v5662_v14 = vld [vmem:[%s7387_s5 + $0xa0] sm:$0xff]  }
 0x21e   : > { %5679 = vtanh.f32 %v4861_v29  ;;  %v5658_v33 = vld [vmem:[%s7387_s5 + $0x90] sm:$0xff]   ;;  %v5661_v29 = vld [vmem:[%s7387_s5 + $0xe0] sm:$0xff]   ;;  %v5663_v30 = vld [vmem:[%s7387_s5 + $0xe8] sm:$0xff]  }
 0x220   : > { %3794 = vmatpush1.bf16.msra.mxu1 %v5619_v32  ;;  %3917 = vmatpush1.bf16.msra.mxu0 %v5622_v36  ;;  %v5664_v32 = vld [vmem:[%s7387_s5 + $0xa8] sm:$0xff]   ;;  %v2716_v36 = vrot.slane %v759_v4, %v842_v19 }
 0x221   : > { %3795 = vmatprep.subr.bf16.mxu1 %v5627_v37  ;;  %3918 = vmatprep.subr.bf16.mxu0 %v5630_v38  ;;  %v5665_v37 = vld [vmem:[%s7387_s5 + $0xf0] sm:$0xff]  }
 0x222   : > { %v5666_v38 = vld [vmem:[%s7387_s5 + $0xb0] sm:$0xff]  }
 0x224   : > { %3796 = vmatpush1.bf16.msra.mxu1 %v5625_v39  ;;  %3919 = vmatpush1.bf16.msra.mxu0 %v5628_v40  ;;  %v5667_v40 = vld [vmem:[%s7387_s5 + $0xf8] sm:$0xff]  }
 0x225   : > { %3797 = vmatprep.subr.bf16.mxu1 %v5633_v41  ;;  %3920 = vmatprep.subr.bf16.mxu0 %v5636_v42 }
 0x227   : > { %v5678_v49 = vpop.eup %5677 }
 0x228   : > { %v5680_v50 = vpop.eup %5679  ;;  %3798 = vmatpush1.bf16.msra.mxu1 %v5631_v45  ;;  %3921 = vmatpush1.bf16.msra.mxu0 %v5634_v46  ;;  %v2702_v54 = vpack.c.bf16 %v5678_v49, %v5678_v49 }
 0x229   : > { %v2703_v52 = vpack.c.bf16 %v5680_v50, %v5680_v50  ;;  %4810 = vmatprep.subr.bf16.mxu1 %v5637_v48  ;;  %v4775_v50 = vld [vmem:[%s7388_s6] ss:$0 sm:$0xff] }
 0x22b   : > { %3799 = vmatprep.mubr.bf16.mxu1 %v2703_v52  ;;  %3922 = vmatprep.mubr.bf16.mxu0 %v2703_v52 }
 0x22c   : > { %3800 = vmatmul.mubr.bf16.vlgmr.msra.gmra.mrb[8].mxu1 %v2702_v54  ;;  %3923 = vmatmul.mubr.bf16.vlgmr.msra.gmra.mrb[8].mxu0 %v2702_v54 }
 0x22d   : > { %4811 = vmatpush3.bf16.msra.mxu1 %v5638_v53 }
 0x22e   : > { %4812 = vmatprep.subr.bf16.mxu1 %v5639_v43 }
 0x231   : > { %4813 = vmatpush3.bf16.msra.mxu1 %v5640_v44 }
 0x232   : > { %4814 = vmatprep.subr.bf16.mxu1 %v5641_v55 }
 0x235   : > { %4815 = vmatpush3.bf16.msra.mxu1 %v5642_v56 }
 0x236   : > { %4816 = vmatprep.subr.bf16.mxu1 %v5643_v57 }
 0x239   : > { %4817 = vmatpush3.bf16.msra.mxu1 %v5644_v58 }
 0x23a   : > { %4818 = vmatprep.subr.bf16.mxu1 %v5645_v59 }
 0x23d   : > { %4819 = vmatpush3.bf16.msra.mxu1 %v5646_v60 }
 0x23e   : > { %4820 = vmatprep.subr.bf16.mxu1 %v5647_v61 }
 0x241   : > { %4821 = vmatpush3.bf16.msra.mxu1 %v5648_v62 }
 0x242   : > { %4822 = vmatprep.subr.bf16.mxu1 %v5649_v63 }
 0x245   : > { %4823 = vmatpush3.bf16.msra.mxu1 %v5650_v0 }
 0x246   : > { %4824 = vmatprep.subr.bf16.mxu1 %v5651_v1 }
 0x249   : > { %4825 = vmatpush3.bf16.msra.mxu1 %v5652_v2 }
 0x24a   : > { %4832 = vmatprep.subr.bf16.mxu1 %v5653_v3 }
 0x2ff   : > { %v3801_v10 = vpop.f32.mrb[8].mxu1  ;;  %v3924_v11 = vpop.f32.mrb[8].mxu0 }
 0x300   : > { %v4862_v12 = vadd.f32 %v3801_v10, %v2708_v5  ;;  %v3803_v13 = vpop.f32.mrb[9].mxu1  ;;  %v3926_v15 = vpop.f32.mrb[9].mxu0  ;;  %v4864_v39 = vadd.f32 %v3924_v11, %v2716_v36 }
 0x301   : > { %v4863_v16 = vadd.f32 %v3803_v13, %v2712_v8  ;;  %v4865_v17 = vadd.f32 %v3926_v15, %v2720_v9  ;;  %v3805_v18 = vpop.f32.mrb[10].mxu1  ;;  %v3928_v21 = vpop.f32.mrb[10].mxu0 }
 0x302   : > { %v3931_v22 = vmax.f32 %v4862_v12, 0.0  ;;  %v3806_v23 = vpop.f32.mrb[11].mxu1  ;;  %v3929_v24 = vpop.f32.mrb[11].mxu0  ;;  %v3933_v19 = vmax.f32 %v4864_v39, 0.0 }
 0x303   : > { %v3932_v25 = vmax.f32 %v4863_v16, 0.0  ;;  %v3934_v31 = vmax.f32 %v4865_v17, 0.0 }
 0x304   : > { %v3935_v20 = vpack.c.bf16 %v3931_v22, %v3931_v22  ;;  %v3937_v41 = vpack.c.bf16 %v3933_v19, %v3933_v19 }
 0x305   : > { %v3936_v47 = vpack.c.bf16 %v3932_v25, %v3932_v25  ;;  %v3938_v26 = vpack.c.bf16 %v3934_v31, %v3934_v31 }
 0x307   : > { %4169 = vmatprep.mubr.bf16.mxu1 %v3936_v47 }
 0x308   : > { %4170 = vmatmul.mubr.bf16.vlgmr.msra.gmra.mrb[12].mxu1 %v3935_v20 }
 0x309   : > { %4833 = vmatpush3.bf16.msra.mxu1 %v5654_v35  ;;  %4209 = vmatprep.mubr.bf16.mxu1 %v3938_v26 }
 0x30a   : > { %4834 = vmatprep.subr.bf16.mxu1 %v5655_v6 }
 0x30d   : > { %4835 = vmatpush3.bf16.msra.mxu1 %v5656_v27 }
 0x30e   : > { %4836 = vmatprep.subr.bf16.mxu1 %v5657_v7 }
 0x311   : > { %4837 = vmatpush3.bf16.msra.mxu1 %v5658_v33 }
 0x312   : > { %4838 = vmatprep.subr.bf16.mxu1 %v5659_v28 }
 0x315   : > { %4839 = vmatpush3.bf16.msra.mxu1 %v5660_v51 }
 0x316   : > { %4840 = vmatprep.subr.bf16.mxu1 %v5661_v29 }
 0x319   : > { %4841 = vmatpush3.bf16.msra.mxu1 %v5662_v14 }
 0x31a   : > { %4842 = vmatprep.subr.bf16.mxu1 %v5663_v30 }
 0x31d   : > { %4843 = vmatpush3.bf16.msra.mxu1 %v5664_v32 }
 0x31e   : > { %4844 = vmatprep.subr.bf16.mxu1 %v5665_v37 }
 0x321   : > { %4845 = vmatpush3.bf16.msra.mxu1 %v5666_v38 }
 0x322   : > { %4846 = vmatprep.subr.bf16.mxu1 %v5667_v40 }
 0x325   : > { %4847 = vmatpush3.bf16.msra.mxu1 %v5668_v34 }
 0x328   : > { %4210 = vmatmul.mubr.bf16.vlgmr.msra.gmra.mrb[16].mxu1 %v3937_v41 }
 0x3db   : > { %v4826_v42 = vpop.f32.mrb[12].mxu1 }
 0x3dc   : > { %v4827_v45 = vpop.f32.mrb[13].mxu1 }
 0x3dd   : > { %v4828_v46 = vadd.f32 %v4827_v45, %v4826_v42  ;;  %v4829_v48 = vpop.f32.mrb[14].mxu1 }
 0x3de   : > { %v4830_v49 = vpop.f32.mrb[15].mxu1 }
 0x3df   : > { %v4172_v54 = vadd.f32 %v4828_v46, %v4775_v50 }
 0x3fb   : > { %v4848_v52 = vpop.f32.mrb[16].mxu1 }
 0x3fc   : > { %v4849_v53 = vpop.f32.mrb[17].mxu1 }
 0x3fd   : > { %v4850_v43 = vadd.f32 %v4849_v53, %v4848_v52  ;;  %v4851_v44 = vpop.f32.mrb[18].mxu1 }
 0x3fe   : > { %v4852_v55 = vpop.f32.mrb[19].mxu1 }
 0x3ff   : > { %v4212_v56 = vadd.f32 %v4850_v43, %v4172_v54 }
 0x401   : > { %4217 = vmax.xlane.f32.xlu0 %v4212_v56 }
 0x48e   : > { %v4218_v57 = vpop.xlane.xlu0 %4217 }
 0x48f   : > { %v4219_v58 = vsub.f32 %v4212_v56, %v4218_v57 }
 0x491   : > { %v4220_v59 = vmul.f32 1.442695, %v4219_v58 }
 0x493   : > { %5681 = vpow2.f32 %v4220_v59 }
 0x49d   : > { %v5682_v60 = vpop.eup %5681 }
 0x49e   : > { %4222 = vadd.xlane.f32.xlu0 %v5682_v60 }
 0x52b   : > { %v4223_v61 = vpop.xlane.xlu0 %4222 }
 0x52c   : > { %5683 = vlog2.f32 %v4223_v61 }
 0x536   : > { %v5684_v62 = vpop.eup %5683 }
 0x537   : > { %v4225_v63 = vmul.f32 0.6931472, %v5684_v62 }
 0x539   : > { %v4226_v0 = vsub.f32 %v4219_v58, %v4225_v63 }
 0x53b   : > { %v4227_v1 = vpack.c.bf16 %v4226_v0, %v4226_v0 }
 0x53d   : > { %4228 = vst [vmem:[%s276_s15] sm:$0xf] %v4227_v1 }
 0x53e PF: > { %s17_s24 = sadd.s32 1, %s5691_s24  }
 0x53f   : > { %p14_p4 = scmp.ge.s32.totalorder %s17_s24, 4  }
 0x541   :  { %16 = sbr.rel (!%p14_p4) target bundleno = 1 (0x1), region = 79 }

</bundles_post_ra>
